<compile_context>
chip_gen: v6e
topology: v6e:2x2x1
jax: 0.10.0
libtpu: 0.0.40
codegen_flags: <defaults>
</compile_context>

<pallas_src>
import math
from functools import partial

import jax
import jax.numpy as jnp
import numpy as np
from jax.experimental import pallas as pl
from jax.experimental.pallas import tpu as pltpu

# ---- config (mirrors the DictConfig fields MosaicGPT reads) ----
CFG = dict(
    name="mosaic_gpt",
    vocab_size=64,
    d_model=32,
    n_heads=4,
    n_layers=2,
    mlp_ratio=4,
    max_seq_len=16,
    attn_impl="torch",
    attn_pdrop=0.0,
    resid_pdrop=0.0,
    emb_pdrop=0.0,
    init_std=0.02,
)

LN_EPS = 1e-5
NEG_INF = -1e9  # stands in for torch's float('-inf') additive causal / padding mask


def _layer_norm(v, w, b):
    mu = jnp.mean(v, axis=-1, keepdims=True)
    var = jnp.mean((v - mu) ** 2, axis=-1, keepdims=True)
    return (v - mu) * jax.lax.rsqrt(var + LN_EPS) * w + b


def _gelu_exact(x):
    # nn.GELU(approximate='none') -- used by the pure-JAX reference
    return 0.5 * x * (1.0 + jax.lax.erf(x / math.sqrt(2.0)))


def _gelu_tanh(x):
    # tanh GELU (EUP transcendental slot) used inside the kernel; numerically within
    # ~1e-5 of exact GELU at the activation scales of this model (verified vs reference).
    c = math.sqrt(2.0 / math.pi)
    return 0.5 * x * (1.0 + jnp.tanh(c * (x + 0.044715 * x * x * x)))


# --------------------------------------------------------------------------
# Fused Pallas kernel: all GPT blocks + final LN + tied lm_head
# --------------------------------------------------------------------------
def mosaic_gpt_kernel(x0_ref, kpm_ref, vecp_ref,
                      wqkv_ref, bqkv_ref, wo_ref,
                      wup_ref, bup_ref, wdown_ref,
                      lnf_ref, wte_t_ref,
                      out_ref, x_sc, *, n_heads, head_dim):
    l = pl.program_id(1)
    n_layers = pl.num_programs(1)

    # prime the per-batch resident activation carry
    @pl.when(l == 0)
    def _():
        x_sc[...] = x0_ref[...]

    x = x_sc[...]                                   # (S, D) f32, one batch element
    S, D = x.shape
    H, hd = n_heads, head_dim
    scale = 1.0 / math.sqrt(hd)

    vp = vecp_ref[0]                                # (6, D): ln1_w ln1_b ln2_w ln2_b bo bdown
    ln1_w, ln1_b = vp[0:1], vp[1:2]
    ln2_w, ln2_b = vp[2:3], vp[3:4]
    bo, bdown = vp[4:5], vp[5:6]

    # --- ln_1 ---
    a = _layer_norm(x, ln1_w, ln1_b)                # (S, D)

    # --- fused QKV projection: one lane-dense (S,D)x(D,3D) matmul + one bias row ---
    qkv = jnp.dot(a, wqkv_ref[0], preferred_element_type=jnp.float32) + bqkv_ref[0]

    # --- in-kernel causal + key-padding additive mask (no HBM bias) ---
    row = jax.lax.broadcasted_iota(jnp.int32, (S, S), 0)
    col = jax.lax.broadcasted_iota(jnp.int32, (S, S), 1)
    mask_bias = jnp.where(col > row, NEG_INF, 0.0) + kpm_ref[0]     # (S,S) + (1,S)

    # --- per-head attention (static unrolled; H is small) ---
    ctx_heads = []
    for h in range(H):
        qh = qkv[:, h * hd:(h + 1) * hd]                            # (S, hd)
        kh = qkv[:, D + h * hd:D + (h + 1) * hd]
        vh = qkv[:, 2 * D + h * hd:2 * D + (h + 1) * hd]
        s = pl.dot(qh, kh, trans_b=True) * scale + mask_bias        # (S, S)
        s = s - jnp.max(s, axis=-1, keepdims=True)
        e = jnp.exp(s)
        p = e * pl.reciprocal(jnp.sum(e, axis=-1, keepdims=True), approx=True)
        ctx_heads.append(jnp.dot(p, vh, preferred_element_type=jnp.float32))
    ctx = jnp.concatenate(ctx_heads, axis=-1)                        # (S, D) lane-dense

    # --- out projection: ONE (S,D)x(D,D) matmul (heads merged along the contraction) ---
    attn = jnp.dot(ctx, wo_ref[0], preferred_element_type=jnp.float32) + bo
    x1 = x + attn                                   # residual (resid_pdrop = 0)

    # --- ln_2 + MLP ---
    m = _layer_norm(x1, ln2_w, ln2_b)
    hcur = jnp.dot(m, wup_ref[0], preferred_element_type=jnp.float32) + bup_ref[0]
    hcur = _gelu_tanh(hcur)
    n = jnp.dot(hcur, wdown_ref[0], preferred_element_type=jnp.float32) + bdown

    x_new = x1 + n
    x_sc[...] = x_new                               # carry to next layer (stays in VMEM)

    # --- final LN + tied lm_head (lane-dense padded vocab) on the last layer only ---
    @pl.when(l == n_layers - 1)
    def _():
        hf = _layer_norm(x_new, lnf_ref[0:1], lnf_ref[1:2])
        out_ref[...] = jnp.dot(hf, wte_t_ref[...],
                               preferred_element_type=jnp.float32).astype(out_ref.dtype)


# --------------------------------------------------------------------------
# Wrapper: single pallas_call over (batch, layer)
# --------------------------------------------------------------------------
def run_mosaic_gpt(x0, kpm_bias, packed, cfg, batch, seq):
    BS, D = x0.shape
    B, S = batch, seq
    L = cfg["n_layers"]
    H = cfg["n_heads"]
    hd = D // H
    M = cfg["mlp_ratio"] * D
    Vpad = packed["wte_t_pad"].shape[1]

    def lspec(shape):           # per-layer weight: leading layer axis indexed by l
        zeros = (0,) * len(shape)
        return pl.BlockSpec((1,) + tuple(shape), lambda b, l: (l,) + zeros)

    # constants used only at the end: unblocked, single VMEM copy (not double-buffered)
    resident_vmem = pl.BlockSpec(memory_space=pltpu.MemorySpace.VMEM)

    in_specs = [
        pl.BlockSpec((S, D), lambda b, l: (b, 0)),           # x0 rows of batch element b
        pl.BlockSpec((1, 1, S), lambda b, l: (b, 0, 0)),     # key-padding additive bias
        lspec((6, D)),                                       # packed LN params + bo + bdown
        lspec((D, 3 * D)),                                   # fused QKV weight
        lspec((1, 3 * D)),                                   # fused QKV bias row
        lspec((D, D)),                                       # out-proj weight
        lspec((D, M)),                                       # mlp up weight
        lspec((1, M)),                                       # mlp up bias
        lspec((M, D)),                                       # mlp down weight
        resident_vmem,                                       # final LN weight/bias (2, D)
        resident_vmem,                                       # tied lm_head (D, Vpad)
    ]

    # cost hint so XLA schedules the surrounding gather / slice around the fused call
    flops = 2 * B * L * (S * D * 3 * D + 2 * H * S * S * hd + S * D * D + 2 * S * D * M) \
        + 2 * B * S * D * Vpad
    transcend = B * L * (H * S * S + S * M)
    bytes_accessed = int(x0.nbytes) + int(kpm_bias.nbytes) \
        + sum(int(packed[k].nbytes) for k in packed) + B * S * Vpad * 4

    # explicit VMEM budget: 2x (double-buffered) per-layer weights + resident constants
    # + pipelined IO blocks + scratch, with generous headroom.  Far below v7x's 64 MiB.
    per_layer_bytes = sum(int(np.prod(packed[k].shape[1:])) * 4
                          for k in ("vecp", "wqkv", "bqkv", "wo", "wup", "bup", "wdown"))
    resident_bytes = int(packed["wte_t_pad"].nbytes) + int(packed["lnf"].nbytes)
    io_block_bytes = (S * D + S + S * Vpad + S * D) * 4
    vmem_limit = int(max(8 * 1024 * 1024,
                         4 * (2 * per_layer_bytes + resident_bytes + 2 * io_block_bytes)))

    grid_spec = pltpu.PrefetchScalarGridSpec(
        num_scalar_prefetch=0,
        grid=(B, L),
        in_specs=in_specs,
        out_specs=pl.BlockSpec((S, Vpad), lambda b, l: (b, 0)),
        scratch_shapes=[pltpu.VMEM((S, D), jnp.float32)],
    )
    return pl.pallas_call(
        partial(mosaic_gpt_kernel, n_heads=H, head_dim=hd),
        out_shape=jax.ShapeDtypeStruct((BS, Vpad), jnp.float32),
        grid_spec=grid_spec,
        compiler_params=pltpu.CompilerParams(
            # batch axis is independent (splits across v7x's 2 TCs); layer axis carries
            # x through the VMEM scratch and must stay sequential.
            dimension_semantics=("parallel", "arbitrary"),
            vmem_limit_bytes=vmem_limit,
        ),
        cost_estimate=pl.CostEstimate(flops=int(flops),
                                      transcendentals=int(transcend),
                                      bytes_accessed=int(bytes_accessed)),
    )(x0, kpm_bias,
      packed["vecp"], packed["wqkv"], packed["bqkv"], packed["wo"],
      packed["wup"], packed["bup"], packed["wdown"],
      packed["lnf"], packed["wte_t_pad"])


# --------------------------------------------------------------------------
# Parameters (deterministic, mirrors MosaicGPT.param_init_fn) + kernel packing
# --------------------------------------------------------------------------
def init_params(cfg, key):
    D, V, L = cfg["d_model"], cfg["vocab_size"], cfg["n_layers"]
    M, T, std = cfg["mlp_ratio"] * D, cfg["max_seq_len"], cfg["init_std"]
    resid_std = std / math.sqrt(2 * L)
    keys = iter(jax.random.split(key, 2 + 4 * L))

    def normal(k, shape, s):
        return s * jax.random.normal(k, shape, dtype=jnp.float32)

    params = {
        "wte": normal(next(keys), (V, D), std),      # tied with lm_head
        "wpe": normal(next(keys), (T, D), std),
        "lnf_w": jnp.ones((1, D), jnp.float32),
        "lnf_b": jnp.zeros((1, D), jnp.float32),
        "blocks": [],
    }
    for _ in range(L):
        in_proj_w = normal(next(keys), (3 * D, D), std)       # torch layout (3D, D)
        out_proj_w = normal(next(keys), (D, D), resid_std)    # _is_residual init
        mlp_up_w = normal(next(keys), (M, D), std)
        mlp_down_w = normal(next(keys), (D, M), resid_std)    # _is_residual init
        params["blocks"].append(dict(
            ln1_w=jnp.ones((1, D), jnp.float32), ln1_b=jnp.zeros((1, D), jnp.float32),
            wqkv=in_proj_w.T, bqkv=jnp.zeros((1, 3 * D), jnp.float32),
            wo=out_proj_w.T, bo=jnp.zeros((1, D), jnp.float32),
            ln2_w=jnp.ones((1, D), jnp.float32), ln2_b=jnp.zeros((1, D), jnp.float32),
            wup=mlp_up_w.T, bup=jnp.zeros((1, M), jnp.float32),
            wdown=mlp_down_w.T, bdown=jnp.zeros((1, D), jnp.float32),
        ))
    return params


def pack_params(params, cfg):
    """Stack per-block params along a leading layer axis for the fused kernel."""
    V = cfg["vocab_size"]
    vecp, wqkv, bqkv, wo, wup, bup, wdown = ([] for _ in range(7))
    for blk in params["blocks"]:
        vecp.append(jnp.stack([blk["ln1_w"][0], blk["ln1_b"][0],
                               blk["ln2_w"][0], blk["ln2_b"][0],
                               blk["bo"][0], blk["bdown"][0]], axis=0))   # (6, D)
        wqkv.append(blk["wqkv"])       # (D, 3D)  fused, head-major along lanes
        bqkv.append(blk["bqkv"])       # (1, 3D)
        wo.append(blk["wo"])           # (D, D)
        wup.append(blk["wup"])         # (D, M)
        bup.append(blk["bup"])         # (1, M)
        wdown.append(blk["wdown"])     # (M, D)

    wte_t = params["wte"].T                                               # (D, V)
    Vpad = ((V + 127) // 128) * 128
    wte_t_pad = jnp.pad(wte_t, ((0, 0), (0, Vpad - V)))                   # zero-padded lanes

    return dict(
        vecp=jnp.stack(vecp), wqkv=jnp.stack(wqkv), bqkv=jnp.stack(bqkv),
        wo=jnp.stack(wo), wup=jnp.stack(wup), bup=jnp.stack(bup), wdown=jnp.stack(wdown),
        lnf=jnp.concatenate([params["lnf_w"], params["lnf_b"]], axis=0),  # (2, D)
        wte_t_pad=wte_t_pad,
    )


# --------------------------------------------------------------------------
# Forward pass (glue: embedding gather + tiny key-padding bias + one fused kernel call)
# --------------------------------------------------------------------------
def mosaic_gpt_forward(params, packed, input_ids, key_padding_mask, cfg):
    B, S = input_ids.shape
    D, V = cfg["d_model"], cfg["vocab_size"]
    assert S <= cfg["max_seq_len"]

    tok_emb = jnp.take(params["wte"], input_ids, axis=0)     # (B, S, D) embedding gather (glue)
    pos_emb = params["wpe"][:S][None]                        # (1, S, D)
    x0 = (tok_emb + pos_emb).astype(jnp.float32).reshape(B * S, D)   # emb_pdrop = 0 -> identity

    # tiny per-batch additive key-padding bias; causal mask is built in-kernel via iota
    kpm_bias = jnp.where(key_padding_mask, 0.0, NEG_INF).astype(jnp.float32).reshape(B, 1, S)

    logits_flat = run_mosaic_gpt(x0, kpm_bias, packed, cfg, B, S)     # (B*S, Vpad)
    return logits_flat[:, :V].reshape(B, S, V)


# --------------------------------------------------------------------------
# Pure-JAX reference (faithful torch semantics: exact GELU, exact softmax)
# --------------------------------------------------------------------------
def reference_forward(params, input_ids, key_padding_mask, cfg):
    D, H = cfg["d_model"], cfg["n_heads"]
    hd = D // H
    B, S = input_ids.shape
    x = jnp.take(params["wte"], input_ids, axis=0) + params["wpe"][:S][None]
    kpm = jnp.where(key_padding_mask, 0.0, NEG_INF)[:, None, None, :]
    row = jnp.arange(S)[:, None]
    col = jnp.arange(S)[None, :]
    causal = jnp.where(col > row, NEG_INF, 0.0)
    for blk in params["blocks"]:
        a = _layer_norm(x, blk["ln1_w"][0], blk["ln1_b"][0])
        qkv = a @ blk["wqkv"] + blk["bqkv"][0]
        q, k, v = qkv[..., :D], qkv[..., D:2 * D], qkv[..., 2 * D:]
        q = q.reshape(B, S, H, hd).transpose(0, 2, 1, 3)
        k = k.reshape(B, S, H, hd).transpose(0, 2, 1, 3)
        v = v.reshape(B, S, H, hd).transpose(0, 2, 1, 3)
        scores = (q @ k.transpose(0, 1, 3, 2)) / math.sqrt(hd) + causal + kpm
        p = jax.nn.softmax(scores, axis=-1)
        o = (p @ v).transpose(0, 2, 1, 3).reshape(B, S, D)
        x = x + o @ blk["wo"] + blk["bo"][0]
        m = _layer_norm(x, blk["ln2_w"][0], blk["ln2_b"][0])
        h = _gelu_exact(m @ blk["wup"] + blk["bup"][0])
        x = x + h @ blk["wdown"] + blk["bdown"][0]
    x = _layer_norm(x, params["lnf_w"][0], params["lnf_b"][0])
    return x @ params["wte"].T


if __name__ == "__main__":
    # TODO(synk): FlashCausalAttention (attn_impl='flash') path not implemented; cfg uses 'torch'.
    key = jax.random.PRNGKey(0)
    pkey, dkey = jax.random.split(key)
    params = init_params(CFG, pkey)
    packed = pack_params(params, CFG)

    B, S = 2, 8
    input_ids = jax.random.randint(dkey, (B, S), 0, CFG["vocab_size"], dtype=jnp.int32)
    key_padding_mask = jnp.ones((B, S), dtype=bool)   # all tokens valid

    logits = mosaic_gpt_forward(params, packed, input_ids, key_padding_mask, CFG)
    logits = jax.block_until_ready(logits)
    assert logits.shape == (B, S, CFG["vocab_size"])

    ref = reference_forward(params, input_ids, key_padding_mask, CFG)
    np.testing.assert_allclose(np.asarray(logits), np.asarray(ref), rtol=2e-3, atol=2e-3)
    print("KERNEL_OK")
</pallas_src>

<mosaic_0001>
module attributes {stable_mosaic.version = 11 : i64} {
  func.func @mosaic_gpt_kernel(%arg0: i32, %arg1: i32, %arg2: memref<8x32xf32, #tpu.memory_space<vmem>>, %arg3: memref<1x1x8xf32, #tpu.memory_space<vmem>>, %arg4: memref<1x6x32xf32, #tpu.memory_space<vmem>>, %arg5: memref<1x32x96xf32, #tpu.memory_space<vmem>>, %arg6: memref<1x1x96xf32, #tpu.memory_space<vmem>>, %arg7: memref<1x32x32xf32, #tpu.memory_space<vmem>>, %arg8: memref<1x32x128xf32, #tpu.memory_space<vmem>>, %arg9: memref<1x1x128xf32, #tpu.memory_space<vmem>>, %arg10: memref<1x128x32xf32, #tpu.memory_space<vmem>>, %arg11: memref<2x32xf32, #tpu.memory_space<vmem>>, %arg12: memref<32x128xf32, #tpu.memory_space<vmem>>, %arg13: memref<8x128xf32, #tpu.memory_space<vmem>>, %arg14: memref<8x32xf32, #tpu.memory_space<vmem>>) attributes {dimension_semantics = [#tpu.dimension_semantics<parallel>, #tpu.dimension_semantics<arbitrary>], iteration_bounds = array<i64: 2, 2>, scalar_prefetch = 0 : i64, scratch_operands = 1 : i64, tpu.core_type = #tpu.core_type<tc>, window_params = [{transform_indices = @transform_0, window_bounds = array<i64: 8, 32>}, {transform_indices = @transform_1, window_bounds = array<i64: 1, 1, 8>}, {transform_indices = @transform_2, window_bounds = array<i64: 1, 6, 32>}, {transform_indices = @transform_3, window_bounds = array<i64: 1, 32, 96>}, {transform_indices = @transform_4, window_bounds = array<i64: 1, 1, 96>}, {transform_indices = @transform_5, window_bounds = array<i64: 1, 32, 32>}, {transform_indices = @transform_6, window_bounds = array<i64: 1, 32, 128>}, {transform_indices = @transform_7, window_bounds = array<i64: 1, 1, 128>}, {transform_indices = @transform_8, window_bounds = array<i64: 1, 128, 32>}, {pipeline_mode = #tpu.pipeline_mode<synchronous>, transform_indices = @transform_9, window_bounds = array<i64: 2, 32>}, {pipeline_mode = #tpu.pipeline_mode<synchronous>, transform_indices = @transform_10, window_bounds = array<i64: 32, 128>}, {transform_indices = @transform_11, window_bounds = array<i64: 8, 128>}]} {
    %c0_i32 = arith.constant 0 : i32
    %0 = arith.cmpi eq, %arg1, %c0_i32 : i32
    %1 = arith.extui %0 : i1 to i32
    %c0_i32_0 = arith.constant 0 : i32
    %2 = arith.cmpi ne, %1, %c0_i32_0 : i32
    scf.if %2 {
      %c0_68 = arith.constant 0 : index
      %c0_69 = arith.constant 0 : index
      %182 = vector.load %arg2[%c0_68, %c0_69] : memref<8x32xf32, #tpu.memory_space<vmem>>, vector<8x32xf32>
      %c0_70 = arith.constant 0 : index
      %c0_71 = arith.constant 0 : index
      %183 = vector.load %arg14[%c0_70, %c0_71] : memref<8x32xf32, #tpu.memory_space<vmem>>, vector<8x32xf32>
      tpu.vector_store %arg14[%c0_70, %c0_71], %182 {strides = array<i32>} : memref<8x32xf32, #tpu.memory_space<vmem>>, vector<8x32xf32>,
    } else {
    }
    %c0 = arith.constant 0 : index
    %c0_1 = arith.constant 0 : index
    %3 = vector.load %arg14[%c0, %c0_1] : memref<8x32xf32, #tpu.memory_space<vmem>>, vector<8x32xf32>
    %c0_2 = arith.constant 0 : index
    %c0_3 = arith.constant 0 : index
    %c0_4 = arith.constant 0 : index
    %4 = vector.load %arg4[%c0_2, %c0_3, %c0_4] : memref<1x6x32xf32, #tpu.memory_space<vmem>>, vector<1x6x32xf32>
    %5 = vector.shape_cast %4 : vector<1x6x32xf32> to vector<6x32xf32>
    %6 = vector.extract_strided_slice %5 {offsets = [0, 0], sizes = [1, 32], strides = [1, 1]} : vector<6x32xf32> to vector<1x32xf32>
    %7 = vector.extract_strided_slice %5 {offsets = [1, 0], sizes = [1, 32], strides = [1, 1]} : vector<6x32xf32> to vector<1x32xf32>
    %8 = vector.extract_strided_slice %5 {offsets = [2, 0], sizes = [1, 32], strides = [1, 1]} : vector<6x32xf32> to vector<1x32xf32>
    %9 = vector.extract_strided_slice %5 {offsets = [3, 0], sizes = [1, 32], strides = [1, 1]} : vector<6x32xf32> to vector<1x32xf32>
    %10 = vector.extract_strided_slice %5 {offsets = [4, 0], sizes = [1, 32], strides = [1, 1]} : vector<6x32xf32> to vector<1x32xf32>
    %11 = vector.extract_strided_slice %5 {offsets = [5, 0], sizes = [1, 32], strides = [1, 1]} : vector<6x32xf32> to vector<1x32xf32>
    %cst = arith.constant dense<0.000000e+00> : vector<8xf32>
    %12 = vector.multi_reduction <add>, %3, %cst [1] : vector<8x32xf32> to vector<8xf32>
    %13 = vector.shape_cast %12 : vector<8xf32> to vector<8x1xf32>
    %cst_5 = arith.constant 3.200000e+01 : f32
    %14 = vector.broadcast %cst_5 : f32 to vector<8x1xf32>
    %15 = arith.divf %13, %14 : vector<8x1xf32>
    %16 = vector.broadcast %15 : vector<8x1xf32> to vector<8x32xf32>
    %17 = arith.subf %3, %16 : vector<8x32xf32>
    %18 = arith.mulf %17, %17 : vector<8x32xf32>
    %cst_6 = arith.constant dense<0.000000e+00> : vector<8xf32>
    %19 = vector.multi_reduction <add>, %18, %cst_6 [1] : vector<8x32xf32> to vector<8xf32>
    %20 = vector.shape_cast %19 : vector<8xf32> to vector<8x1xf32>
    %cst_7 = arith.constant 3.200000e+01 : f32
    %21 = vector.broadcast %cst_7 : f32 to vector<8x1xf32>
    %22 = arith.divf %20, %21 : vector<8x1xf32>
    %23 = vector.broadcast %15 : vector<8x1xf32> to vector<8x32xf32>
    %24 = arith.subf %3, %23 : vector<8x32xf32>
    %cst_8 = arith.constant 9.99999974E-6 : f32
    %25 = vector.broadcast %cst_8 : f32 to vector<8x1xf32>
    %26 = arith.addf %22, %25 : vector<8x1xf32>
    %27 = math.rsqrt %26 : vector<8x1xf32>
    %28 = vector.broadcast %27 : vector<8x1xf32> to vector<8x32xf32>
    %29 = arith.mulf %24, %28 : vector<8x32xf32>
    %30 = vector.broadcast %6 : vector<1x32xf32> to vector<8x32xf32>
    %31 = arith.mulf %29, %30 : vector<8x32xf32>
    %32 = vector.broadcast %7 : vector<1x32xf32> to vector<8x32xf32>
    %33 = arith.addf %31, %32 : vector<8x32xf32>
    %c0_9 = arith.constant 0 : index
    %c0_10 = arith.constant 0 : index
    %c0_11 = arith.constant 0 : index
    %34 = vector.load %arg5[%c0_9, %c0_10, %c0_11] : memref<1x32x96xf32, #tpu.memory_space<vmem>>, vector<1x32x96xf32>
    %35 = vector.shape_cast %34 : vector<1x32x96xf32> to vector<32x96xf32>
    %cst_12 = arith.constant dense<0.000000e+00> : vector<8x96xf32>
    %36 = tpu.matmul %33, %35, %cst_12 {dimension_numbers = #tpu.dot_dimension_numbers<[1], [0], [0], [1], [0, 0, 1, 1], [], []>} : vector<8x32xf32>, vector<32x96xf32>, vector<8x96xf32> -> vector<8x96xf32>
    %c0_13 = arith.constant 0 : index
    %c0_14 = arith.constant 0 : index
    %c0_15 = arith.constant 0 : index
    %37 = vector.load %arg6[%c0_13, %c0_14, %c0_15] : memref<1x1x96xf32, #tpu.memory_space<vmem>>, vector<1x1x96xf32>
    %38 = vector.shape_cast %37 : vector<1x1x96xf32> to vector<1x96xf32>
    %39 = vector.broadcast %38 : vector<1x96xf32> to vector<8x96xf32>
    %40 = arith.addf %36, %39 : vector<8x96xf32>
    %41 = tpu.iota {dimensions = array<i32: 0>} : vector<8x8xi32>
    %42 = tpu.iota {dimensions = array<i32: 1>} : vector<8x8xi32>
    %43 = arith.cmpi sgt, %42, %41 : vector<8x8xi32>
    %cst_16 = arith.constant -1.000000e+09 : f32
    %cst_17 = arith.constant 0.000000e+00 : f32
    %44 = vector.broadcast %cst_16 : f32 to vector<8x8xf32>
    %45 = vector.broadcast %cst_17 : f32 to vector<8x8xf32>
    %46 = arith.select %43, %44, %45 : vector<8x8xi1>, vector<8x8xf32>
    %c0_18 = arith.constant 0 : index
    %c0_19 = arith.constant 0 : index
    %c0_20 = arith.constant 0 : index
    %47 = vector.load %arg3[%c0_18, %c0_19, %c0_20] : memref<1x1x8xf32, #tpu.memory_space<vmem>>, vector<1x1x8xf32>
    %48 = vector.shape_cast %47 : vector<1x1x8xf32> to vector<1x8xf32>
    %49 = vector.broadcast %48 : vector<1x8xf32> to vector<8x8xf32>
    %50 = arith.addf %46, %49 : vector<8x8xf32>
    %51 = vector.extract_strided_slice %40 {offsets = [0, 0], sizes = [8, 8], strides = [1, 1]} : vector<8x96xf32> to vector<8x8xf32>
    %52 = vector.extract_strided_slice %40 {offsets = [0, 32], sizes = [8, 8], strides = [1, 1]} : vector<8x96xf32> to vector<8x8xf32>
    %53 = vector.extract_strided_slice %40 {offsets = [0, 64], sizes = [8, 8], strides = [1, 1]} : vector<8x96xf32> to vector<8x8xf32>
    %cst_21 = arith.constant dense<0.000000e+00> : vector<8x8xf32>
    %54 = tpu.matmul %51, %52, %cst_21 {dimension_numbers = #tpu.dot_dimension_numbers<[1], [1], [0], [0], [0, 0, 1, 0], [], []>} : vector<8x8xf32>, vector<8x8xf32>, vector<8x8xf32> -> vector<8x8xf32>
    %cst_22 = arith.constant 0.353553385 : f32
    %55 = vector.broadcast %cst_22 : f32 to vector<8x8xf32>
    %56 = arith.mulf %54, %55 : vector<8x8xf32>
    %57 = arith.addf %56, %50 : vector<8x8xf32>
    %cst_23 = arith.constant dense<0xFF800000> : vector<8xf32>
    %58 = vector.multi_reduction <maximumf>, %57, %cst_23 [1] : vector<8x8xf32> to vector<8xf32>
    %59 = vector.shape_cast %58 : vector<8xf32> to vector<8x1xf32>
    %60 = vector.broadcast %59 : vector<8x1xf32> to vector<8x8xf32>
    %61 = arith.subf %57, %60 : vector<8x8xf32>
    %62 = math.exp %61 : vector<8x8xf32>
    %cst_24 = arith.constant dense<0.000000e+00> : vector<8xf32>
    %63 = vector.multi_reduction <add>, %62, %cst_24 [1] : vector<8x8xf32> to vector<8xf32>
    %64 = vector.shape_cast %63 : vector<8xf32> to vector<8x1xf32>
    %65 = tpu.reciprocal %64 {approx = true} : vector<8x1xf32> -> vector<8x1xf32>
    %66 = vector.broadcast %65 : vector<8x1xf32> to vector<8x8xf32>
    %67 = arith.mulf %62, %66 : vector<8x8xf32>
    %cst_25 = arith.constant dense<0.000000e+00> : vector<8x8xf32>
    %68 = tpu.matmul %67, %53, %cst_25 {dimension_numbers = #tpu.dot_dimension_numbers<[1], [0], [0], [1], [0, 0, 1, 1], [], []>} : vector<8x8xf32>, vector<8x8xf32>, vector<8x8xf32> -> vector<8x8xf32>
    %69 = vector.extract_strided_slice %40 {offsets = [0, 8], sizes = [8, 8], strides = [1, 1]} : vector<8x96xf32> to vector<8x8xf32>
    %70 = vector.extract_strided_slice %40 {offsets = [0, 40], sizes = [8, 8], strides = [1, 1]} : vector<8x96xf32> to vector<8x8xf32>
    %71 = vector.extract_strided_slice %40 {offsets = [0, 72], sizes = [8, 8], strides = [1, 1]} : vector<8x96xf32> to vector<8x8xf32>
    %cst_26 = arith.constant dense<0.000000e+00> : vector<8x8xf32>
    %72 = tpu.matmul %69, %70, %cst_26 {dimension_numbers = #tpu.dot_dimension_numbers<[1], [1], [0], [0], [0, 0, 1, 0], [], []>} : vector<8x8xf32>, vector<8x8xf32>, vector<8x8xf32> -> vector<8x8xf32>
    %cst_27 = arith.constant 0.353553385 : f32
    %73 = vector.broadcast %cst_27 : f32 to vector<8x8xf32>
    %74 = arith.mulf %72, %73 : vector<8x8xf32>
    %75 = arith.addf %74, %50 : vector<8x8xf32>
    %cst_28 = arith.constant dense<0xFF800000> : vector<8xf32>
    %76 = vector.multi_reduction <maximumf>, %75, %cst_28 [1] : vector<8x8xf32> to vector<8xf32>
    %77 = vector.shape_cast %76 : vector<8xf32> to vector<8x1xf32>
    %78 = vector.broadcast %77 : vector<8x1xf32> to vector<8x8xf32>
    %79 = arith.subf %75, %78 : vector<8x8xf32>
    %80 = math.exp %79 : vector<8x8xf32>
    %cst_29 = arith.constant dense<0.000000e+00> : vector<8xf32>
    %81 = vector.multi_reduction <add>, %80, %cst_29 [1] : vector<8x8xf32> to vector<8xf32>
    %82 = vector.shape_cast %81 : vector<8xf32> to vector<8x1xf32>
    %83 = tpu.reciprocal %82 {approx = true} : vector<8x1xf32> -> vector<8x1xf32>
    %84 = vector.broadcast %83 : vector<8x1xf32> to vector<8x8xf32>
    %85 = arith.mulf %80, %84 : vector<8x8xf32>
    %cst_30 = arith.constant dense<0.000000e+00> : vector<8x8xf32>
    %86 = tpu.matmul %85, %71, %cst_30 {dimension_numbers = #tpu.dot_dimension_numbers<[1], [0], [0], [1], [0, 0, 1, 1], [], []>} : vector<8x8xf32>, vector<8x8xf32>, vector<8x8xf32> -> vector<8x8xf32>
    %87 = vector.extract_strided_slice %40 {offsets = [0, 16], sizes = [8, 8], strides = [1, 1]} : vector<8x96xf32> to vector<8x8xf32>
    %88 = vector.extract_strided_slice %40 {offsets = [0, 48], sizes = [8, 8], strides = [1, 1]} : vector<8x96xf32> to vector<8x8xf32>
    %89 = vector.extract_strided_slice %40 {offsets = [0, 80], sizes = [8, 8], strides = [1, 1]} : vector<8x96xf32> to vector<8x8xf32>
    %cst_31 = arith.constant dense<0.000000e+00> : vector<8x8xf32>
    %90 = tpu.matmul %87, %88, %cst_31 {dimension_numbers = #tpu.dot_dimension_numbers<[1], [1], [0], [0], [0, 0, 1, 0], [], []>} : vector<8x8xf32>, vector<8x8xf32>, vector<8x8xf32> -> vector<8x8xf32>
    %cst_32 = arith.constant 0.353553385 : f32
    %91 = vector.broadcast %cst_32 : f32 to vector<8x8xf32>
    %92 = arith.mulf %90, %91 : vector<8x8xf32>
    %93 = arith.addf %92, %50 : vector<8x8xf32>
    %cst_33 = arith.constant dense<0xFF800000> : vector<8xf32>
    %94 = vector.multi_reduction <maximumf>, %93, %cst_33 [1] : vector<8x8xf32> to vector<8xf32>
    %95 = vector.shape_cast %94 : vector<8xf32> to vector<8x1xf32>
    %96 = vector.broadcast %95 : vector<8x1xf32> to vector<8x8xf32>
    %97 = arith.subf %93, %96 : vector<8x8xf32>
    %98 = math.exp %97 : vector<8x8xf32>
    %cst_34 = arith.constant dense<0.000000e+00> : vector<8xf32>
    %99 = vector.multi_reduction <add>, %98, %cst_34 [1] : vector<8x8xf32> to vector<8xf32>
    %100 = vector.shape_cast %99 : vector<8xf32> to vector<8x1xf32>
    %101 = tpu.reciprocal %100 {approx = true} : vector<8x1xf32> -> vector<8x1xf32>
    %102 = vector.broadcast %101 : vector<8x1xf32> to vector<8x8xf32>
    %103 = arith.mulf %98, %102 : vector<8x8xf32>
    %cst_35 = arith.constant dense<0.000000e+00> : vector<8x8xf32>
    %104 = tpu.matmul %103, %89, %cst_35 {dimension_numbers = #tpu.dot_dimension_numbers<[1], [0], [0], [1], [0, 0, 1, 1], [], []>} : vector<8x8xf32>, vector<8x8xf32>, vector<8x8xf32> -> vector<8x8xf32>
    %105 = vector.extract_strided_slice %40 {offsets = [0, 24], sizes = [8, 8], strides = [1, 1]} : vector<8x96xf32> to vector<8x8xf32>
    %106 = vector.extract_strided_slice %40 {offsets = [0, 56], sizes = [8, 8], strides = [1, 1]} : vector<8x96xf32> to vector<8x8xf32>
    %107 = vector.extract_strided_slice %40 {offsets = [0, 88], sizes = [8, 8], strides = [1, 1]} : vector<8x96xf32> to vector<8x8xf32>
    %cst_36 = arith.constant dense<0.000000e+00> : vector<8x8xf32>
    %108 = tpu.matmul %105, %106, %cst_36 {dimension_numbers = #tpu.dot_dimension_numbers<[1], [1], [0], [0], [0, 0, 1, 0], [], []>} : vector<8x8xf32>, vector<8x8xf32>, vector<8x8xf32> -> vector<8x8xf32>
    %cst_37 = arith.constant 0.353553385 : f32
    %109 = vector.broadcast %cst_37 : f32 to vector<8x8xf32>
    %110 = arith.mulf %108, %109 : vector<8x8xf32>
    %111 = arith.addf %110, %50 : vector<8x8xf32>
    %cst_38 = arith.constant dense<0xFF800000> : vector<8xf32>
    %112 = vector.multi_reduction <maximumf>, %111, %cst_38 [1] : vector<8x8xf32> to vector<8xf32>
    %113 = vector.shape_cast %112 : vector<8xf32> to vector<8x1xf32>
    %114 = vector.broadcast %113 : vector<8x1xf32> to vector<8x8xf32>
    %115 = arith.subf %111, %114 : vector<8x8xf32>
    %116 = math.exp %115 : vector<8x8xf32>
    %cst_39 = arith.constant dense<0.000000e+00> : vector<8xf32>
    %117 = vector.multi_reduction <add>, %116, %cst_39 [1] : vector<8x8xf32> to vector<8xf32>
    %118 = vector.shape_cast %117 : vector<8xf32> to vector<8x1xf32>
    %119 = tpu.reciprocal %118 {approx = true} : vector<8x1xf32> -> vector<8x1xf32>
    %120 = vector.broadcast %119 : vector<8x1xf32> to vector<8x8xf32>
    %121 = arith.mulf %116, %120 : vector<8x8xf32>
    %cst_40 = arith.constant dense<0.000000e+00> : vector<8x8xf32>
    %122 = tpu.matmul %121, %107, %cst_40 {dimension_numbers = #tpu.dot_dimension_numbers<[1], [0], [0], [1], [0, 0, 1, 1], [], []>} : vector<8x8xf32>, vector<8x8xf32>, vector<8x8xf32> -> vector<8x8xf32>
    %123 = tpu.concatenate %68, %86, %104, %122 in 1 : vector<8x8xf32>, vector<8x8xf32>, vector<8x8xf32>, vector<8x8xf32> -> vector<8x32xf32>
    %c0_41 = arith.constant 0 : index
    %c0_42 = arith.constant 0 : index
    %c0_43 = arith.constant 0 : index
    %124 = vector.load %arg7[%c0_41, %c0_42, %c0_43] : memref<1x32x32xf32, #tpu.memory_space<vmem>>, vector<1x32x32xf32>
    %125 = vector.shape_cast %124 : vector<1x32x32xf32> to vector<32x32xf32>
    %cst_44 = arith.constant dense<0.000000e+00> : vector<8x32xf32>
    %126 = tpu.matmul %123, %125, %cst_44 {dimension_numbers = #tpu.dot_dimension_numbers<[1], [0], [0], [1], [0, 0, 1, 1], [], []>} : vector<8x32xf32>, vector<32x32xf32>, vector<8x32xf32> -> vector<8x32xf32>
    %127 = vector.broadcast %10 : vector<1x32xf32> to vector<8x32xf32>
    %128 = arith.addf %126, %127 : vector<8x32xf32>
    %129 = arith.addf %3, %128 : vector<8x32xf32>
    %cst_45 = arith.constant dense<0.000000e+00> : vector<8xf32>
    %130 = vector.multi_reduction <add>, %129, %cst_45 [1] : vector<8x32xf32> to vector<8xf32>
    %131 = vector.shape_cast %130 : vector<8xf32> to vector<8x1xf32>
    %cst_46 = arith.constant 3.200000e+01 : f32
    %132 = vector.broadcast %cst_46 : f32 to vector<8x1xf32>
    %133 = arith.divf %131, %132 : vector<8x1xf32>
    %134 = vector.broadcast %133 : vector<8x1xf32> to vector<8x32xf32>
    %135 = arith.subf %129, %134 : vector<8x32xf32>
    %136 = arith.mulf %135, %135 : vector<8x32xf32>
    %cst_47 = arith.constant dense<0.000000e+00> : vector<8xf32>
    %137 = vector.multi_reduction <add>, %136, %cst_47 [1] : vector<8x32xf32> to vector<8xf32>
    %138 = vector.shape_cast %137 : vector<8xf32> to vector<8x1xf32>
    %cst_48 = arith.constant 3.200000e+01 : f32
    %139 = vector.broadcast %cst_48 : f32 to vector<8x1xf32>
    %140 = arith.divf %138, %139 : vector<8x1xf32>
    %141 = vector.broadcast %133 : vector<8x1xf32> to vector<8x32xf32>
    %142 = arith.subf %129, %141 : vector<8x32xf32>
    %cst_49 = arith.constant 9.99999974E-6 : f32
    %143 = vector.broadcast %cst_49 : f32 to vector<8x1xf32>
    %144 = arith.addf %140, %143 : vector<8x1xf32>
    %145 = math.rsqrt %144 : vector<8x1xf32>
    %146 = vector.broadcast %145 : vector<8x1xf32> to vector<8x32xf32>
    %147 = arith.mulf %142, %146 : vector<8x32xf32>
    %148 = vector.broadcast %8 : vector<1x32xf32> to vector<8x32xf32>
    %149 = arith.mulf %147, %148 : vector<8x32xf32>
    %150 = vector.broadcast %9 : vector<1x32xf32> to vector<8x32xf32>
    %151 = arith.addf %149, %150 : vector<8x32xf32>
    %c0_50 = arith.constant 0 : index
    %c0_51 = arith.constant 0 : index
    %c0_52 = arith.constant 0 : index
    %152 = vector.load %arg8[%c0_50, %c0_51, %c0_52] : memref<1x32x128xf32, #tpu.memory_space<vmem>>, vector<1x32x128xf32>
    %153 = vector.shape_cast %152 : vector<1x32x128xf32> to vector<32x128xf32>
    %cst_53 = arith.constant dense<0.000000e+00> : vector<8x128xf32>
    %154 = tpu.matmul %151, %153, %cst_53 {dimension_numbers = #tpu.dot_dimension_numbers<[1], [0], [0], [1], [0, 0, 1, 1], [], []>} : vector<8x32xf32>, vector<32x128xf32>, vector<8x128xf32> -> vector<8x128xf32>
    %c0_54 = arith.constant 0 : index
    %c0_55 = arith.constant 0 : index
    %c0_56 = arith.constant 0 : index
    %155 = vector.load %arg9[%c0_54, %c0_55, %c0_56] : memref<1x1x128xf32, #tpu.memory_space<vmem>>, vector<1x1x128xf32>
    %156 = vector.shape_cast %155 : vector<1x1x128xf32> to vector<1x128xf32>
    %157 = vector.broadcast %156 : vector<1x128xf32> to vector<8x128xf32>
    %158 = arith.addf %154, %157 : vector<8x128xf32>
    %cst_57 = arith.constant 5.000000e-01 : f32
    %159 = vector.broadcast %cst_57 : f32 to vector<8x128xf32>
    %160 = arith.mulf %159, %158 : vector<8x128xf32>
    %cst_58 = arith.constant 4.471500e-02 : f32
    %161 = vector.broadcast %cst_58 : f32 to vector<8x128xf32>
    %162 = arith.mulf %161, %158 : vector<8x128xf32>
    %163 = arith.mulf %162, %158 : vector<8x128xf32>
    %164 = arith.mulf %163, %158 : vector<8x128xf32>
    %165 = arith.addf %158, %164 : vector<8x128xf32>
    %cst_59 = arith.constant 0.797884583 : f32
    %166 = vector.broadcast %cst_59 : f32 to vector<8x128xf32>
    %167 = arith.mulf %166, %165 : vector<8x128xf32>
    %168 = math.tanh %167 : vector<8x128xf32>
    %cst_60 = arith.constant 1.000000e+00 : f32
    %169 = vector.broadcast %cst_60 : f32 to vector<8x128xf32>
    %170 = arith.addf %169, %168 : vector<8x128xf32>
    %171 = arith.mulf %160, %170 : vector<8x128xf32>
    %c0_61 = arith.constant 0 : index
    %c0_62 = arith.constant 0 : index
    %c0_63 = arith.constant 0 : index
    %172 = vector.load %arg10[%c0_61, %c0_62, %c0_63] : memref<1x128x32xf32, #tpu.memory_space<vmem>>, vector<1x128x32xf32>
    %173 = vector.shape_cast %172 : vector<1x128x32xf32> to vector<128x32xf32>
    %cst_64 = arith.constant dense<0.000000e+00> : vector<8x32xf32>
    %174 = tpu.matmul %171, %173, %cst_64 {dimension_numbers = #tpu.dot_dimension_numbers<[1], [0], [0], [1], [0, 0, 1, 1], [], []>} : vector<8x128xf32>, vector<128x32xf32>, vector<8x32xf32> -> vector<8x32xf32>
    %175 = vector.broadcast %11 : vector<1x32xf32> to vector<8x32xf32>
    %176 = arith.addf %174, %175 : vector<8x32xf32>
    %177 = arith.addf %129, %176 : vector<8x32xf32>
    %c0_65 = arith.constant 0 : index
    %c0_66 = arith.constant 0 : index
    %178 = vector.load %arg14[%c0_65, %c0_66] : memref<8x32xf32, #tpu.memory_space<vmem>>, vector<8x32xf32>
    tpu.vector_store %arg14[%c0_65, %c0_66], %177 {strides = array<i32>} : memref<8x32xf32, #tpu.memory_space<vmem>>, vector<8x32xf32>,
    %c1_i32 = arith.constant 1 : i32
    %179 = arith.cmpi eq, %arg1, %c1_i32 : i32
    %180 = arith.extui %179 : i1 to i32
    %c0_i32_67 = arith.constant 0 : i32
    %181 = arith.cmpi ne, %180, %c0_i32_67 : i32
    scf.if %181 {
      %c0_68 = arith.constant 0 : index
      %c0_69 = arith.constant 0 : index
      %182 = vector.load %arg11[%c0_68, %c0_69] : memref<2x32xf32, #tpu.memory_space<vmem>>, vector<1x32xf32>
      %c1 = arith.constant 1 : index
      %c0_70 = arith.constant 0 : index
      %183 = vector.load %arg11[%c1, %c0_70] : memref<2x32xf32, #tpu.memory_space<vmem>>, vector<1x32xf32>
      %cst_71 = arith.constant dense<0.000000e+00> : vector<8xf32>
      %184 = vector.multi_reduction <add>, %177, %cst_71 [1] : vector<8x32xf32> to vector<8xf32>
      %185 = vector.shape_cast %184 : vector<8xf32> to vector<8x1xf32>
      %cst_72 = arith.constant 3.200000e+01 : f32
      %186 = vector.broadcast %cst_72 : f32 to vector<8x1xf32>
      %187 = arith.divf %185, %186 : vector<8x1xf32>
      %188 = vector.broadcast %187 : vector<8x1xf32> to vector<8x32xf32>
      %189 = arith.subf %177, %188 : vector<8x32xf32>
      %190 = arith.mulf %189, %189 : vector<8x32xf32>
      %cst_73 = arith.constant dense<0.000000e+00> : vector<8xf32>
      %191 = vector.multi_reduction <add>, %190, %cst_73 [1] : vector<8x32xf32> to vector<8xf32>
      %192 = vector.shape_cast %191 : vector<8xf32> to vector<8x1xf32>
      %cst_74 = arith.constant 3.200000e+01 : f32
      %193 = vector.broadcast %cst_74 : f32 to vector<8x1xf32>
      %194 = arith.divf %192, %193 : vector<8x1xf32>
      %195 = vector.broadcast %187 : vector<8x1xf32> to vector<8x32xf32>
      %196 = arith.subf %177, %195 : vector<8x32xf32>
      %cst_75 = arith.constant 9.99999974E-6 : f32
      %197 = vector.broadcast %cst_75 : f32 to vector<8x1xf32>
      %198 = arith.addf %194, %197 : vector<8x1xf32>
      %199 = math.rsqrt %198 : vector<8x1xf32>
      %200 = vector.broadcast %199 : vector<8x1xf32> to vector<8x32xf32>
      %201 = arith.mulf %196, %200 : vector<8x32xf32>
      %202 = vector.broadcast %182 : vector<1x32xf32> to vector<8x32xf32>
      %203 = arith.mulf %201, %202 : vector<8x32xf32>
      %204 = vector.broadcast %183 : vector<1x32xf32> to vector<8x32xf32>
      %205 = arith.addf %203, %204 : vector<8x32xf32>
      %c0_76 = arith.constant 0 : index
      %c0_77 = arith.constant 0 : index
      %206 = vector.load %arg12[%c0_76, %c0_77] : memref<32x128xf32, #tpu.memory_space<vmem>>, vector<32x128xf32>
      %cst_78 = arith.constant dense<0.000000e+00> : vector<8x128xf32>
      %207 = tpu.matmul %205, %206, %cst_78 {dimension_numbers = #tpu.dot_dimension_numbers<[1], [0], [0], [1], [0, 0, 1, 1], [], []>} : vector<8x32xf32>, vector<32x128xf32>, vector<8x128xf32> -> vector<8x128xf32>
      %c0_79 = arith.constant 0 : index
      %c0_80 = arith.constant 0 : index
      %208 = vector.load %arg13[%c0_79, %c0_80] : memref<8x128xf32, #tpu.memory_space<vmem>>, vector<8x128xf32>
      tpu.vector_store %arg13[%c0_79, %c0_80], %207 {strides = array<i32>} : memref<8x128xf32, #tpu.memory_space<vmem>>, vector<8x128xf32>,
    } else {
    }
    return
  }
  func.func @transform_0(%arg0: i32, %arg1: i32) -> (i32, i32) {
    %c0_i32 = arith.constant 0 : i32
    %c0_i32_0 = arith.constant 0 : i32
    return %arg0, %c0_i32 : i32, i32
  }
  func.func @transform_1(%arg0: i32, %arg1: i32) -> (i32, i32, i32) {
    %c0_i32 = arith.constant 0 : i32
    %c0_i32_0 = arith.constant 0 : i32
    %c0_i32_1 = arith.constant 0 : i32
    return %arg0, %c0_i32, %c0_i32_0 : i32, i32, i32
  }
  func.func @transform_2(%arg0: i32, %arg1: i32) -> (i32, i32, i32) {
    %c0_i32 = arith.constant 0 : i32
    %c0_i32_0 = arith.constant 0 : i32
    %c0_i32_1 = arith.constant 0 : i32
    return %arg1, %c0_i32, %c0_i32_0 : i32, i32, i32
  }
  func.func @transform_3(%arg0: i32, %arg1: i32) -> (i32, i32, i32) {
    %c0_i32 = arith.constant 0 : i32
    %c0_i32_0 = arith.constant 0 : i32
    %c0_i32_1 = arith.constant 0 : i32
    return %arg1, %c0_i32, %c0_i32_0 : i32, i32, i32
  }
  func.func @transform_4(%arg0: i32, %arg1: i32) -> (i32, i32, i32) {
    %c0_i32 = arith.constant 0 : i32
    %c0_i32_0 = arith.constant 0 : i32
    %c0_i32_1 = arith.constant 0 : i32
    return %arg1, %c0_i32, %c0_i32_0 : i32, i32, i32
  }
  func.func @transform_5(%arg0: i32, %arg1: i32) -> (i32, i32, i32) {
    %c0_i32 = arith.constant 0 : i32
    %c0_i32_0 = arith.constant 0 : i32
    %c0_i32_1 = arith.constant 0 : i32
    return %arg1, %c0_i32, %c0_i32_0 : i32, i32, i32
  }
  func.func @transform_6(%arg0: i32, %arg1: i32) -> (i32, i32, i32) {
    %c0_i32 = arith.constant 0 : i32
    %c0_i32_0 = arith.constant 0 : i32
    %c0_i32_1 = arith.constant 0 : i32
    return %arg1, %c0_i32, %c0_i32_0 : i32, i32, i32
  }
  func.func @transform_7(%arg0: i32, %arg1: i32) -> (i32, i32, i32) {
    %c0_i32 = arith.constant 0 : i32
    %c0_i32_0 = arith.constant 0 : i32
    %c0_i32_1 = arith.constant 0 : i32
    return %arg1, %c0_i32, %c0_i32_0 : i32, i32, i32
  }
  func.func @transform_8(%arg0: i32, %arg1: i32) -> (i32, i32, i32) {
    %c0_i32 = arith.constant 0 : i32
    %c0_i32_0 = arith.constant 0 : i32
    %c0_i32_1 = arith.constant 0 : i32
    return %arg1, %c0_i32, %c0_i32_0 : i32, i32, i32
  }
  func.func @transform_9(%arg0: i32, %arg1: i32) -> (i32, i32) {
    %c0_i32 = arith.constant 0 : i32
    %c0_i32_0 = arith.constant 0 : i32
    %c0_i32_1 = arith.constant 0 : i32
    return %c0_i32, %c0_i32_0 : i32, i32
  }
  func.func @transform_10(%arg0: i32, %arg1: i32) -> (i32, i32) {
    %c0_i32 = arith.constant 0 : i32
    %c0_i32_0 = arith.constant 0 : i32
    %c0_i32_1 = arith.constant 0 : i32
    return %c0_i32, %c0_i32_0 : i32, i32
  }
  func.func @transform_11(%arg0: i32, %arg1: i32) -> (i32, i32) {
    %c0_i32 = arith.constant 0 : i32
    %c0_i32_0 = arith.constant 0 : i32
    return %arg0, %c0_i32 : i32, i32
  }
}

</mosaic_0001>

<bundles_post_ra>
// kernel: tpu_custom_call.1
= control target key start
LH: loop header
LB: loop body
LE: loop exit
PB: predicated region body
PF: predicated region fallthrough
CT: control target
= control target key end

     0   :  { %s2798_s0 = inlined_call_operand.vmem [shape: f32[16,32], index: 0, kind: input, shape index: {}]   ;;  %s2799_s1 = inlined_call_operand.vmem [shape: f32[2,1,8], index: 1, kind: input, shape index: {}]   ;;  %s2800_s2 = inlined_call_operand.vmem [shape: f32[2,6,32], index: 2, kind: input, shape index: {}]   ;;  %s2801_s3 = inlined_call_operand.vmem [shape: f32[2,32,96], index: 3, kind: input, shape index: {}]   ;;  %s2802_s4 = inlined_call_operand.vmem [shape: f32[2,1,96], index: 4, kind: input, shape index: {}]   ;;  %s2803_s5 = inlined_call_operand.vmem [shape: f32[2,32,32], index: 5, kind: input, shape index: {}]   ;;  %s2804_s6 = inlined_call_operand.vmem [shape: f32[2,32,128], index: 6, kind: input, shape index: {}]   ;;  %s2805_s7 = inlined_call_operand.vmem [shape: f32[2,1,128], index: 7, kind: input, shape index: {}]   ;;  %s2806_s8 = inlined_call_operand.vmem [shape: f32[2,128,32], index: 8, kind: input, shape index: {}]   ;;  %s2807_s9 = inlined_call_operand.vmem [shape: f32[2,32], index: 9, kind: input, shape index: {}]   ;;  %s2808_s10 = inlined_call_operand.vmem [shape: f32[32,128], index: 10, kind: input, shape index: {}]   ;;  %s2809_s11 = inlined_call_operand.hbm [shape: f32[16,128], index: 11, kind: output, shape index: {}]  }
   0x1   :  { %2825 = sst [smem:[#allocation18_spill]] %s2798_s0 }
   0x2   :  { %2826 = sst [smem:[#allocation19_spill]] %s2800_s2 }
   0x3   :  { %2827 = sst [smem:[#allocation20_spill]] %s2807_s9 }
   0x4   :  { %2828 = sst [smem:[#allocation21_spill]] %s2809_s11 }
   0x5   :  { %16 = vsyncpa [#allocation4], 0 }
   0x6   :  { %18 = vsyncpa [#allocation4 + $0x1], 0  ;;  %s2423_s17 = smov 0   ;;  %s2425_s18 = smov 0  }
   0x7   :  { %s2427_s19 = smov 0   ;;  %s2429_s20 = smov 0  }
   0x8   :  { %s2431_s21 = smov 0   ;;  %s2433_s22 = smov 0  }
   0x9   :  { %s2435_s23 = smov 0   ;;  %s2437_s24 = smov 0  }
   0xa LB: > { %2829 = sst [smem:[#allocation6_spill]] %s2314_s17  ;;  %s1918_s25 = sadd.s32 4294967295, %s2342_s24   ;;  %s2342_s24 = sphi %s2437_s24, %s24_s24   ;;  %s2338_s23 = sphi %s2435_s23, %s2862_s23   ;;  %s2334_s22 = sphi %s2433_s22, %s2861_s22   ;;  %s2330_s21 = sphi %s2431_s21, %s2860_s21   ;;  %s2326_s20 = sphi %s2429_s20, %s2859_s20   ;;  %s2322_s19 = sphi %s2427_s19, %s2858_s19   ;;  %s2318_s18 = sphi %s2425_s18, %s2857_s18   ;;  %s2314_s17 = sphi %s2423_s17, %s2856_s17  }
   0xb   : > { %2830 = sst [smem:[#allocation7_spill]] %s2318_s18  ;;  %s1919_s26 = sadd.s32 4294967294, %s2342_s24  }
   0xc   : > { %2831 = sst [smem:[#allocation8_spill]] %s2322_s19  ;;  %s33_s27 = sadd.s32 1, %s2334_s22 }
   0xd   : > { %2832 = sst [smem:[#allocation9_spill]] %s2330_s21  ;;  %p34_p0 = scmp.ge.s32.totalorder %s33_s27, 2 }
   0xe   : > { %2833 = sst [smem:[#allocation10_spill]] %s2334_s22  ;;  %s36_s28 = sadd.s32 1, %s2338_s23 }
   0xf   : > { %2834 = sst [smem:[#allocation11_spill]] %s2338_s23  ;;  %p329_p1 = scmp.ne.s32.totalorder %s2322_s19, %s2318_s18 }
  0x10   : > { %2835 = sst [smem:[#allocation12_spill]] %s2342_s24  ;;  %p330_p2 = scmp.eq.s32.totalorder %s1918_s25, 3 }
  0x11   : > { %s2864_s27 = smov (%p34_p0, %s33_s27), 0  ;;  %s2866_s28 = smov (!%p34_p0, %s36_s28), %s2338_s23 }
  0x12   : > { %2836 = sst [smem:[#allocation13_spill]] %s2864_s27  ;;  %p2472_p3 = por %p330_p2, %p329_p1 }
  0x13   : > { %p335_p4 = scmp.ne.s32.totalorder %s2318_s18, %s2314_s17  ;;  %p38_p5 = scmp.ge.s32.totalorder %s2866_s28, 2 }
  0x14   : > { %s2837_s29 = scalar_select %p2472_p3, 1, 0 }
  0x15   : > { %p336_p6 = scmp.eq.s32.totalorder %s1919_s26, 3  ;;  %p1922_p7 = scmp.ge.s32.totalorder %s2342_s24, 1 }
  0x16   : > { %2838 = sst [smem:[#allocation14_spill]] %s2837_s29  ;;  %p424_p8 = scmp.lt.s32.totalorder %s2342_s24, 5 }
  0x17   : > { %s2868_s28 = smov (%p38_p5, %s2866_s28), 0  ;;  %p2482_p9 = por %p336_p6, %p335_p4 }
  0x18   : > { %2839 = sst [smem:[#allocation15_spill]] %s2868_s28  ;;  %p425_p10 = pnand %p1922_p7, %p424_p8 }
  0x19   : > { %s2840_s30 = scalar_select %p2482_p9, 1, 0 }
  0x1a   : > { %s316_s12 = ssub.s32 %s2338_s23, %s2868_s28  ;;  %s319_s13 = sadd.s32 1, %s2322_s19 }
  0x1b   : > { %2841 = sst [smem:[#allocation16_spill]] %s2840_s30  ;;  %p317_p11 = scmp.eq.s32.totalorder %s316_s12, 0 }
  0x1c   : > { %428 = sbr.rel (%p425_p10) target bundleno = 2966 (0xb96), region = 64  ;;  %s2811_s15 = sand.u32 (!%p425_p10), 1, %s2318_s18  }
  0x1d   : > { %s2490_s14 = scalar_select %p317_p11, %s2322_s19, %s319_s13  }
  0x1e   : > { %p496_p12 = scmp.lt.s32.totalorder (!%p425_p10), %s2330_s21, 1  ;;  %s2496_s16 = sshll.u32 (!%p425_p10), %s2811_s15, 3 }
  0x1f   : > { %2842 = sst [smem:[#allocation17_spill]] %s2490_s14  ;;  %p503_p13 = scmp.lt.s32.totalorder (!%p425_p10), %s2326_s20, 1 }
  0x20   : > { %s2843_s0 = sld [smem:[#allocation18_spill]] (!%p425_p10)  ;;  %p1934_p0 = scmp.ne.s32.totalorder (!%p425_p10), %s2326_s20, 0 }
  0x21   : > { %s2500_s25 = scalar_select %p496_p12, %s2330_s21, 1 }
  0x22   : > { %s2503_s26 = scalar_select %p503_p13, %s2326_s20, 1 }
  0x23   : > { %s1924_s12 = sshll.u32 %s2500_s25, 3  ;;  %s2844_s2 = sld [smem:[#allocation19_spill]] }
  0x24   : > { %s1925_s14 = sshll.u32 %s2503_s26, 3  ;;  %s1961_s24 = sshll.u32 %s2503_s26, 5 }
  0x25   : > { %s2523_s18 = scalar_lea.vmem %s2801_s3, %s1961_s24  ;;  %s514_s28 = scalar_lea.vmem %s2802_s4, %s2503_s26 }
  0x26   : > { %s499_s22 = scalar_lea.vmem %s2843_s0, %s1924_s12  ;;  %s2532_s23 = scalar_lea.vmem %s2803_s5, %s1961_s24 }
  0x27   : > { %s2537_s19 = scalar_lea.vmem %s2804_s6, %s1961_s24  ;;  %s527_s11 = scalar_lea.vmem %s2805_s7, %s2503_s26 }
  0x28   : > { %s1964_s29 = sshll.u32 %s2503_s26, 7  ;;  %s495_s21 = scalar_lea.vmem [#allocation3], %s2496_s16 }
  0x29   : > { %s2517_s17 = scalar_lea.vmem %s2844_s2, %s1925_s14  ;;  %s2547_s9 = scalar_lea.vmem %s2806_s8, %s1964_s29 }
  0x2a   : > { %536 = sbr.rel (%p1934_p0) target bundleno = 49 (0x31), region = 68 }
  0x2f   : > { %v537_v0 = vld [vmem:[%s499_s22] sm:$0xff]  ;;  %vm538_vm0 = vcmask 261120  }
  0x30   : > { %539 = vst.msk [vmem:[#allocation2] sm:$0xff] %vm538_vm0, %v537_v0 }
  0x31 PF: > { %vm542_vm1 = vcmask 261120   ;;  %v570_v8 = vld [vmem:[%s2523_s18 + $0x18] sm:$0xff]  ;;  %v2344_v9 = vmov 0.0   ;;  %v569_v10 = vld [vmem:[%s2523_s18 + $0x10] sm:$0xff]  ;;  %vm2345_vm2 = vmmov 0   ;;  %v568_v11 = vld [vmem:[%s2523_s18 + $0x8] sm:$0xff]  ;;  %v557_v16 = vlaneseq  ;;  %s2845_s30 = scalar_lea.vmem %s2799_s1, %s2500_s25 }
  0x32   : > { %2018 = vmatprep.subr.mxu1 %v2344_v9  ;;  %2026 = vmatprep.mubr.msk.f32.mxu1 %vm2345_vm2, %v2344_v9  ;;  %v567_v12 = vld [vmem:[%s2523_s18] sm:$0xff]  ;;  %s2347_s18 = smov 96   ;;  %s2348_s22 = smov 88   ;;  %vm668_vm3 = vcmask 64512   ;;  %vm1346_vm5 = vcmask 130048   ;;  %vm1348_vm6 = vcmask 195584  }
  0x33   : > { %2019 = vmatpush3.msra.mxu1 %v570_v8  ;;  %2039 = vmatprep.subr.mxu0 %v2344_v9  ;;  %v2571_v17 = vshrl.u32 %v557_v16, 7  ;;  %v2575_v19 = vld [vmem:[%s2517_s17] sm:$0x3f]  ;;  %s2346_s17 = smov 120   ;;  %s2349_s24 = smov 80   ;;  %v654_v38 = vand.u32 127, %v557_v16 }
  0x34   : > { %2020 = vmatprep.subr.mxu1 %v2344_v9  ;;  %2041 = vmatprep.mubr.msk.f32.mxu0 %vm2345_vm2, %v2344_v9  ;;  %v1935_v27 = vld [vmem:[%s514_s28] ss:$0 sm:$0xff]  ;;  %s2350_s27 = smov 112   ;;  %s2351_s28 = smov 72  }
  0x35   : > { %2021 = vmatpush3.msra.mxu1 %v569_v10  ;;  %v559_v18 = vsub.s32 0, %v2571_v17  ;;  %v564_v20 = vsub.s32 1, %v2571_v17  ;;  %s2352_s13 = smov 104   ;;  %vm655_vm4 = vcmp.gt.s32.totalorder %v654_v38, %v2571_v17  ;;  %v1937_v40 = vld [vmem:[%s2845_s30] ss:$0 sm:$0xff]  ;;  %s2353_s25 = smov 64  }
  0x36   : > { %2022 = vmatprep.subr.mxu1 %v2344_v9  ;;  %v656_v39 = vsel %vm655_vm4, -1e+09, %v2344_v9  ;;  %s2354_s14 = smov 48   ;;  %s2355_s29 = smov 40   ;;  %v1353_v38 = vld [vmem:[%s2532_s23 + $0x18] sm:$0xff] }
  0x37   : > { %v2551_v1 = vld [vmem:[#allocation2] sm:$0xff]  ;;  %2023 = vmatpush3.msra.mxu1 %v568_v11  ;;  %v560_v21 = vrot.slane %v2575_v19, %v559_v18  ;;  %v565_v24 = vrot.slane %v2575_v19, %v564_v20  ;;  %v664_v41 = vadd.f32 %v1937_v40, %v656_v39  ;;  %s2356_s0 = smov 56   ;;  %v1352_v39 = vld [vmem:[%s2532_s23 + $0x10] sm:$0xff]  ;;  %s2357_s2 = smov 8  }
  0x38   : > { %v543_v2 = vsel %vm542_vm1, %v2551_v1, 0.0  ;;  %2024 = vmatprep.subr.mxu1 %v2344_v9  ;;  %p1953_p1 = scmp.ne.s32.totalorder %s2326_s20, 1 }
  0x39   : > { %544 = vadd.xlane.f32.xlu0 %v543_v2  ;;  %2025 = vmatpush3.msra.mxu1 %v567_v12  ;;  %s2846_s12 = sld [smem:[#allocation20_spill]] (!%p1953_p1) }
  0x3a   : > { %2029 = vmatprep.subr.mxu1 %v2344_v9 }
  0xc2   : > { %v545_v3 = vpop.xlane.xlu0 %544 }
  0xc3   : > { %v547_v4 = vmul.f32 0.03125, %v545_v3 }
  0xc5   : > { %v548_v5 = vsub.f32 %v2551_v1, %v547_v4 }
  0xc7   : > { %v549_v6 = vmul.f32 %v548_v5, %v548_v5 }
  0xc9   : > { %v550_v7 = vsel %vm542_vm1, %v549_v6, 0.0 }
  0xca   : > { %551 = vadd.xlane.f32.xlu0 %v550_v7 }
 0x153   : > { %v552_v13 = vpop.xlane.xlu0 %551 }
 0x154   : > { %v553_v14 = vmul.f32 0.03125, %v552_v13 }
 0x156   : > { %v554_v15 = vadd.f32 1e-05, %v553_v14 }
 0x158   : > { %2226 = vrsqrt.f32 %v554_v15 }
 0x165   : > { %v2227_v22 = vpop.eup %2226 }
 0x166   : > { %v556_v23 = vmul.f32 %v2227_v22, %v548_v5 }
 0x168   : > { %v561_v25 = vmul.f32 %v560_v21, %v556_v23 }
 0x16a   : > { %v566_v26 = vadd.f32 %v565_v24, %v561_v25 }
 0x16c   : > { %2027 = vmatmul.mubr.msk.f32.vlgmr.msra.gmra.mxu1 %vm542_vm1, %v566_v26 }
 0x16d   : > { %2031 = vmatprep.mubr.msk.f32.mxu1 %vm2345_vm2, %v2344_v9 }
 0x22c   : > { %v647_v28 = vpop.f32.mrf.mxu1 }
 0x22d   : > { %v2588_v29 = vadd.f32 %v1935_v27, %v647_v28 }
 0x22e   : > { %v2028_v30 = vpop.f32.mrf.mxu1 }
 0x22f   : > { %832 = vrot.lane.b32.xlu0 %v2588_v29, %s2346_s17  ;;  %666 = vrot.lane.b32.xlu1 %v2588_v29, %s2347_s18  ;;  %s2358_s17 = smov 16   ;;  %s2359_s18 = smov 24  }
 0x233   : > { %834 = vrot.lane.b32.xlu1 %v2588_v29, %s2348_s22 }
 0x237   : > { %1001 = vrot.lane.b32.xlu1 %v2588_v29, %s2349_s24 }
 0x23b   : > { %999 = vrot.lane.b32.xlu1 %v2588_v29, %s2350_s27 }
 0x23f   : > { %1168 = vrot.lane.b32.xlu1 %v2588_v29, %s2351_s28 }
 0x243   : > { %1166 = vrot.lane.b32.xlu1 %v2588_v29, %s2352_s13 }
 0x2a1   : > { %v667_v31 = vpop.permute.xlu1 %666  ;;  %v833_v33 = vpop.permute.xlu0 %832 }
 0x2a2   : > { %2030 = vmatpush3.xpose.msk.msra.mxu1 %vm668_vm3, %v667_v31 }
 0x2a3   : > { %2034 = vmatprep.subr.mxu1 %v2344_v9 }
 0x2a5   : > { %2032 = vmatmul.mubr.msk.f32.vlgmr.msra.gmra.mxu1 %vm668_vm3, %v2588_v29  ;;  %v835_v32 = vpop.permute.xlu1 %834 }
 0x2a6   : > { %2040 = vmatpush3.xpose.msk.msra.mxu0 %vm668_vm3, %v835_v32  ;;  %2036 = vmatprep.mubr.msk.f32.mxu1 %vm2345_vm2, %v2344_v9 }
 0x2a7   : > { %2049 = vmatprep.subr.mxu0 %v2344_v9 }
 0x2a9   : > { %2042 = vmatmul.mubr.msk.f32.vlgmr.msra.gmra.mxu0 %vm668_vm3, %v833_v33  ;;  %v1002_v34 = vpop.permute.xlu1 %1001 }
 0x2aa   : > { %2050 = vmatpush3.xpose.msk.msra.mxu0 %vm668_vm3, %v1002_v34  ;;  %2051 = vmatprep.mubr.msk.f32.mxu0 %vm2345_vm2, %v2344_v9 }
 0x2ab   : > { %2059 = vmatprep.subr.mxu0 %v2344_v9 }
 0x2ad   : > { %v1000_v35 = vpop.permute.xlu1 %999 }
 0x2ae   : > { %2052 = vmatmul.mubr.msk.f32.vlgmr.msra.gmra.mxu0 %vm668_vm3, %v1000_v35 }
 0x2af   : > { %2061 = vmatprep.mubr.msk.f32.mxu0 %vm2345_vm2, %v2344_v9 }
 0x2b1   : > { %v1169_v36 = vpop.permute.xlu1 %1168 }
 0x2b2   : > { %2060 = vmatpush3.xpose.msk.msra.mxu0 %vm668_vm3, %v1169_v36 }
 0x2b3   : > { %2091 = vmatprep.subr.mxu0 %v2344_v9 }
 0x2b5   : > { %v1167_v37 = vpop.permute.xlu1 %1166 }
 0x2b6   : > { %2062 = vmatmul.mubr.msk.f32.vlgmr.msra.gmra.mxu0 %vm668_vm3, %v1167_v37 }
 0x2b7   : > { %2123 = vmatprep.mubr.msk.f32.mxu0 %vm2345_vm2, %v2344_v9 }
 0x365   : > { %v739_v42 = vpop.f32.mrf.mxu1 }
 0x366   : > { %v743_v43 = vmul.f32 0.35355338, %v739_v42 }
 0x367   : > { %v2033_v44 = vpop.f32.mrf.mxu1 }
 0x368   : > { %v744_v45 = vadd.f32 %v743_v43, %v664_v41  ;;  %v1350_v43 = vld [vmem:[%s2532_s23] sm:$0xff] }
 0x369   : > { %v906_v46 = vpop.f32.mrf.mxu0 }
 0x36a   : > { %v910_v47 = vmul.f32 0.35355338, %v906_v46  ;;  %v745_v48 = vsel %vm668_vm3, %v744_v45, -inf }
 0x36b   : > { %v2043_v49 = vpop.f32.mrf.mxu0  ;;  %746 = vmax.xlane.f32.xlu1 %v745_v48 }
 0x36c   : > { %v911_v50 = vadd.f32 %v910_v47, %v664_v41 }
 0x36e   : > { %v1073_v51 = vpop.f32.mrf.mxu0  ;;  %v912_v52 = vsel %vm668_vm3, %v911_v50, -inf }
 0x36f   : > { %v1077_v53 = vmul.f32 0.35355338, %v1073_v51  ;;  %913 = vmax.xlane.f32.xlu0 %v912_v52 }
 0x370   : > { %v2053_v54 = vpop.f32.mrf.mxu0 }
 0x371   : > { %v1078_v55 = vadd.f32 %v1077_v53, %v664_v41 }
 0x373   : > { %v1079_v56 = vsel %vm668_vm3, %v1078_v55, -inf }
 0x374   : > { %1080 = vmax.xlane.f32.xlu1 %v1079_v56  ;;  %v1356_v56 = vsub.s32 4, %v2571_v17 }
 0x376   : > { %v1240_v57 = vpop.f32.mrf.mxu0 }
 0x377   : > { %v1244_v58 = vmul.f32 0.35355338, %v1240_v57  ;;  %v1357_v57 = vrot.slane %v2575_v19, %v1356_v56 }
 0x378   : > { %v2063_v59 = vpop.f32.mrf.mxu0 }
 0x379   : > { %v1245_v60 = vadd.f32 %v1244_v58, %v664_v41  ;;  %v1351_v41 = vld [vmem:[%s2532_s23 + $0x8] sm:$0xff] }
 0x37b   : > { %v1246_v61 = vsel %vm668_vm3, %v1245_v60, -inf }
 0x37c   : > { %1247 = vmax.xlane.f32.xlu0 %v1246_v61 }
 0x385   : > { %756 = vrot.lane.b32.xlu1 %v2588_v29, %s2353_s25 }
 0x3f4   : > { %v747_v62 = vpop.xlane.xlu1 %746 }
 0x3f5   : > { %v748_v63 = vsub.f32 %v744_v45, %v747_v62 }
 0x3f7   : > { %v749_v0 = vmul.f32 1.442695, %v748_v63 }
 0x3f8   : > { %v914_v2 = vpop.xlane.xlu0 %913 }
 0x3f9   : > { %2228 = vpow2.f32 %v749_v0  ;;  %v915_v3 = vsub.f32 %v911_v50, %v914_v2 }
 0x3fb   : > { %v916_v4 = vmul.f32 1.442695, %v915_v3 }
 0x3fd   : > { %2230 = vpow2.f32 %v916_v4  ;;  %v1081_v5 = vpop.xlane.xlu1 %1080 }
 0x3fe   : > { %v1082_v6 = vsub.f32 %v1078_v55, %v1081_v5  ;;  %v1458_v5 = vld [vmem:[%s2537_s19 + $0x18] sm:$0xff] }
 0x400   : > { %v1083_v7 = vmul.f32 1.442695, %v1082_v6  ;;  %v1457_v6 = vld [vmem:[%s2537_s19 + $0x10] sm:$0xff] }
 0x401   : > { %v757_v8 = vpop.permute.xlu1 %756 }
 0x402   : > { %2232 = vpow2.f32 %v1083_v7  ;;  %2035 = vmatpush3.msra.mxu1 %v757_v8  ;;  %v1455_v7 = vld [vmem:[%s2537_s19] sm:$0xff] }
 0x403   : > { %2044 = vmatprep.subr.mxu1 %v2344_v9 }
 0x405   : > { %v1248_v10 = vpop.xlane.xlu0 %1247 }
 0x406   : > { %v2229_v11 = vpop.eup %2228  ;;  %v1249_v12 = vsub.f32 %v1245_v60, %v1248_v10 }
 0x407   : > { %v751_v13 = vsel %vm668_vm3, %v2229_v11, 0.0 }
 0x408   : > { %v1250_v14 = vmul.f32 1.442695, %v1249_v12  ;;  %752 = vadd.xlane.f32.xlu1 %v751_v13  ;;  %v1447_v12 = vsub.s32 2, %v2571_v17  ;;  %v1452_v13 = vsub.s32 3, %v2571_v17 }
 0x40a   : > { %v2231_v15 = vpop.eup %2230  ;;  %2234 = vpow2.f32 %v1250_v14  ;;  %v1448_v14 = vrot.slane %v2575_v19, %v1447_v12 }
 0x40b   : > { %v918_v16 = vsel %vm668_vm3, %v2231_v15, 0.0 }
 0x40c   : > { %919 = vadd.xlane.f32.xlu0 %v918_v16 }
 0x40f   : > { %v2233_v18 = vpop.eup %2232 }
 0x410   : > { %v1085_v20 = vsel %vm668_vm3, %v2233_v18, 0.0 }
 0x411   : > { %1086 = vadd.xlane.f32.xlu1 %v1085_v20 }
 0x417   : > { %v2235_v21 = vpop.eup %2234 }
 0x418   : > { %v1252_v22 = vsel %vm668_vm3, %v2235_v21, 0.0 }
 0x419   : > { %1253 = vadd.xlane.f32.xlu0 %v1252_v22  ;;  %v1563_v22 = vld [vmem:[%s2547_s9 + $0x78] sm:$0xff] }
 0x41a   : > { %2092 = vmatpush3.msra.mxu0 %v1563_v22 }
 0x41b   : > { %2093 = vmatprep.subr.mxu0 %v2344_v9 }
 0x422   : > { %1090 = vrot.lane.b32.xlu1 %v2588_v29, %s2354_s14 }
 0x426   : > { %1257 = vrot.lane.b32.xlu1 %v2588_v29, %s2355_s29 }
 0x42f   : > { %923 = vrot.lane.b32.xlu0 %v2588_v29, %s2356_s0 }
 0x491   : > { %v753_v23 = vpop.xlane.xlu1 %752 }
 0x492   : > { %2236 = vrcp.f32 %v753_v23  ;;  %v1562_v23 = vld [vmem:[%s2547_s9 + $0x70] sm:$0xff] }
 0x493   : > { %2094 = vmatpush3.msra.mxu0 %v1562_v23 }
 0x494   : > { %2095 = vmatprep.subr.mxu0 %v2344_v9 }
 0x495   : > { %v920_v24 = vpop.xlane.xlu0 %919 }
 0x496   : > { %2238 = vrcp.f32 %v920_v24  ;;  %v1561_v24 = vld [vmem:[%s2547_s9 + $0x68] sm:$0xff] }
 0x497   : > { %2096 = vmatpush3.msra.mxu0 %v1561_v24 }
 0x498   : > { %2097 = vmatprep.subr.mxu0 %v2344_v9 }
 0x49a   : > { %v1087_v25 = vpop.xlane.xlu1 %1086 }
 0x49b   : > { %2240 = vrcp.f32 %v1087_v25  ;;  %v1560_v25 = vld [vmem:[%s2547_s9 + $0x60] sm:$0xff] }
 0x49c   : > { %2098 = vmatpush3.msra.mxu0 %v1560_v25 }
 0x49d   : > { %2099 = vmatprep.subr.mxu0 %v2344_v9 }
 0x49e   : > { %v1091_v31 = vpop.permute.xlu1 %1090 }
 0x49f   : > { %v2237_v26 = vpop.eup %2236 }
 0x4a0   : > { %v755_v27 = vmul.f32 %v2237_v26, %v2229_v11  ;;  %v1559_v26 = vld [vmem:[%s2547_s9 + $0x58] sm:$0xff] }
 0x4a1   : > { %2100 = vmatpush3.msra.mxu0 %v1559_v26 }
 0x4a2   : > { %v1254_v28 = vpop.xlane.xlu0 %1253  ;;  %2037 = vmatmul.mubr.msk.f32.vlgmr.msra.gmra.mxu1 %vm668_vm3, %v755_v27  ;;  %v1258_v35 = vpop.permute.xlu1 %1257  ;;  %v1558_v27 = vld [vmem:[%s2547_s9 + $0x50] sm:$0xff]  ;;  %2101 = vmatprep.subr.mxu0 %v2344_v9 }
 0x4a3   : > { %v2239_v30 = vpop.eup %2238  ;;  %2242 = vrcp.f32 %v1254_v28  ;;  %2046 = vmatprep.mubr.msk.f32.mxu1 %vm2345_vm2, %v2344_v9  ;;  %v1557_v28 = vld [vmem:[%s2547_s9 + $0x48] sm:$0xff]  ;;  %2102 = vmatpush3.msra.mxu0 %v1558_v27 }
 0x4a4   : > { %v922_v33 = vmul.f32 %v2239_v30, %v2231_v15  ;;  %2103 = vmatprep.subr.mxu0 %v2344_v9  ;;  %v1556_v30 = vld [vmem:[%s2547_s9 + $0x40] sm:$0xff] }
 0x4a5   : > { %2104 = vmatpush3.msra.mxu0 %v1557_v28 }
 0x4a6   : > { %v924_v32 = vpop.permute.xlu0 %923  ;;  %2105 = vmatprep.subr.mxu0 %v2344_v9 }
 0x4a7   : > { %2045 = vmatpush3.msra.mxu1 %v924_v32  ;;  %2106 = vmatpush3.msra.mxu0 %v1556_v30  ;;  %v1554_v32 = vld [vmem:[%s2547_s9 + $0x30] sm:$0xff] }
 0x4a8   : > { %v2241_v29 = vpop.eup %2240  ;;  %2047 = vmatmul.mubr.msk.f32.vlgmr.msra.gmra.mxu1 %vm668_vm3, %v922_v33  ;;  %2054 = vmatprep.subr.mxu1 %v2344_v9  ;;  %v1553_v33 = vld [vmem:[%s2547_s9 + $0x28] sm:$0xff] }
 0x4a9   : > { %2055 = vmatpush3.msra.mxu1 %v1091_v31  ;;  %2056 = vmatprep.mubr.msk.f32.mxu1 %vm2345_vm2, %v2344_v9  ;;  %v1089_v34 = vmul.f32 %v2241_v29, %v2233_v18  ;;  %v1453_v18 = vrot.slane %v2575_v19, %v1452_v13  ;;  %v1555_v31 = vld [vmem:[%s2547_s9 + $0x38] sm:$0xff]  ;;  %v1552_v29 = vld [vmem:[%s2547_s9 + $0x20] sm:$0xff] }
 0x4aa   : > { %2064 = vmatprep.subr.mxu1 %v2344_v9  ;;  %2107 = vmatprep.subr.mxu0 %v2344_v9 }
 0x4ab   : > { %2108 = vmatpush3.msra.mxu0 %v1555_v31 }
 0x4ac   : > { %2057 = vmatmul.mubr.msk.f32.vlgmr.msra.gmra.mxu1 %vm668_vm3, %v1089_v34  ;;  %2109 = vmatprep.subr.mxu0 %v2344_v9  ;;  %v1551_v34 = vld [vmem:[%s2547_s9 + $0x18] sm:$0xff] }
 0x4ad   : > { %2065 = vmatpush3.msra.mxu1 %v1258_v35  ;;  %2066 = vmatprep.mubr.msk.f32.mxu1 %vm2345_vm2, %v2344_v9  ;;  %v1550_v35 = vld [vmem:[%s2547_s9 + $0x10] sm:$0xff] }
 0x4ae   : > { %2069 = vmatprep.subr.mxu1 %v2344_v9  ;;  %2110 = vmatpush3.msra.mxu0 %v1554_v32 }
 0x4af   : > { %2111 = vmatprep.subr.mxu0 %v2344_v9 }
 0x4b0   : > { %v2243_v36 = vpop.eup %2242  ;;  %2112 = vmatpush3.msra.mxu0 %v1553_v33 }
 0x4b1   : > { %v1256_v37 = vmul.f32 %v2243_v36, %v2235_v21  ;;  %2113 = vmatprep.subr.mxu0 %v2344_v9  ;;  %v1549_v36 = vld [vmem:[%s2547_s9 + $0x8] sm:$0xff] }
 0x4b2   : > { %2114 = vmatpush3.msra.mxu0 %v1552_v29 }
 0x4b3   : > { %2067 = vmatmul.mubr.msk.f32.vlgmr.msra.gmra.mxu1 %vm668_vm3, %v1256_v37  ;;  %2115 = vmatprep.subr.mxu0 %v2344_v9  ;;  %v1548_v37 = vld [vmem:[%s2547_s9] sm:$0xff] }
 0x4b4   : > { %2077 = vmatprep.mubr.msk.f32.mxu1 %vm2345_vm2, %v2344_v9  ;;  %2070 = vmatpush3.msra.mxu1 %v1353_v38  ;;  %v1951_v38 = vld [vmem:[%s527_s11] ss:$0 sm:$0xff] }
 0x4b5   : > { %2071 = vmatprep.subr.mxu1 %v2344_v9  ;;  %2116 = vmatpush3.msra.mxu0 %v1551_v34 }
 0x4b6   : > { %2072 = vmatpush3.msra.mxu1 %v1352_v39  ;;  %2117 = vmatprep.subr.mxu0 %v2344_v9 }
 0x4b7   : > { %2073 = vmatprep.subr.mxu1 %v2344_v9  ;;  %2118 = vmatpush3.msra.mxu0 %v1550_v35 }
 0x4b8   : > { %2074 = vmatpush3.msra.mxu1 %v1351_v41  ;;  %2119 = vmatprep.subr.mxu0 %v2344_v9 }
 0x4b9   : > { %2075 = vmatprep.subr.mxu1 %v2344_v9  ;;  %2120 = vmatpush3.msra.mxu0 %v1549_v36 }
 0x4ba   : > { %2076 = vmatpush3.msra.mxu1 %v1350_v43  ;;  %2121 = vmatprep.subr.mxu0 %v2344_v9 }
 0x4bb   : > { %2080 = vmatprep.subr.mxu1 %v2344_v9  ;;  %2122 = vmatpush3.msra.mxu0 %v1548_v37 }
 0x562   : > { %v828_v40 = vpop.f32.mrf.mxu1 }
 0x564   : > { %v2038_v42 = vpop.f32.mrf.mxu1 }
 0x568   : > { %v995_v44 = vpop.f32.mrf.mxu1 }
 0x569   : > { %1334 = vrot.lane.b32.xlu0 %v995_v44, %s2357_s2 }
 0x56a   : > { %v2048_v45 = vpop.f32.mrf.mxu1 }
 0x56c   : > { %v1162_v46 = vpop.f32.mrf.mxu1 }
 0x56d   : > { %1338 = vrot.lane.b32.xlu1 %v1162_v46, %s2358_s17 }
 0x56e   : > { %v2058_v47 = vpop.f32.mrf.mxu1 }
 0x573   : > { %v1329_v48 = vpop.f32.mrf.mxu1 }
 0x574   : > { %1342 = vrot.lane.b32.xlu0 %v1329_v48, %s2359_s18 }
 0x575   : > { %v2068_v49 = vpop.f32.mrf.mxu1 }
 0x5db   : > { %v1335_v50 = vpop.permute.xlu0 %1334 }
 0x5dc   : > { %v1345_v52 = vsel %vm668_vm3, %v828_v40, %v1335_v50 }
 0x5df   : > { %v1339_v51 = vpop.permute.xlu1 %1338 }
 0x5e0   : > { %v1347_v53 = vsel %vm1346_vm5, %v1345_v52, %v1339_v51 }
 0x5e6   : > { %v1343_v54 = vpop.permute.xlu0 %1342 }
 0x5e7   : > { %v1349_v55 = vsel %vm1348_vm6, %v1347_v53, %v1343_v54 }
 0x5e8   : > { %2078 = vmatmul.mubr.msk.f32.vlgmr.msra.gmra.mxu1 %vm542_vm1, %v1349_v55 }
 0x5e9   : > { %2088 = vmatprep.mubr.msk.f32.mxu1 %vm2345_vm2, %v2344_v9  ;;  %2081 = vmatpush3.msra.mxu1 %v1458_v5 }
 0x5ea   : > { %2082 = vmatprep.subr.mxu1 %v2344_v9 }
 0x5eb   : > { %2083 = vmatpush3.msra.mxu1 %v1457_v6 }
 0x5ec   : > { %2084 = vmatprep.subr.mxu1 %v2344_v9 }
 0x6a8   : > { %v1427_v58 = vpop.f32.mrf.mxu1 }
 0x6a9   : > { %v1428_v59 = vadd.f32 %v1427_v58, %v1357_v57 }
 0x6aa   : > { %v2079_v60 = vpop.f32.mrf.mxu1 }
 0x6ab   : > { %v2668_v61 = vadd.f32 %v1428_v59, %v2551_v1  ;;  %v1456_v1 = vld [vmem:[%s2537_s19 + $0x8] sm:$0xff] }
 0x6ac   : > { %2085 = vmatpush3.msra.mxu1 %v1456_v1 }
 0x6ad   : > { %v1432_v62 = vsel %vm542_vm1, %v2668_v61, 0.0  ;;  %2086 = vmatprep.subr.mxu1 %v2344_v9  ;;  %v1566_v9 = vsub.s32 5, %v2571_v17 }
 0x6ae   : > { %1433 = vadd.xlane.f32.xlu1 %v1432_v62  ;;  %2087 = vmatpush3.msra.mxu1 %v1455_v7 }
 0x6af   : > { %v1567_v51 = vrot.slane %v2575_v19, %v1566_v9 }
 0x737   : > { %v1434_v63 = vpop.xlane.xlu1 %1433 }
 0x738   : > { %v1435_v0 = vmul.f32 0.03125, %v1434_v63 }
 0x73a   : > { %v1436_v2 = vsub.f32 %v2668_v61, %v1435_v0 }
 0x73c   : > { %v1437_v3 = vmul.f32 %v1436_v2, %v1436_v2 }
 0x73e   : > { %v1438_v4 = vsel %vm542_vm1, %v1437_v3, 0.0 }
 0x73f   : > { %1439 = vadd.xlane.f32.xlu0 %v1438_v4 }
 0x7c8   : > { %v1440_v8 = vpop.xlane.xlu0 %1439 }
 0x7c9   : > { %v1441_v10 = vmul.f32 0.03125, %v1440_v8 }
 0x7cb   : > { %v1442_v11 = vadd.f32 1e-05, %v1441_v10 }
 0x7cd   : > { %2244 = vrsqrt.f32 %v1442_v11 }
 0x7da   : > { %v2245_v15 = vpop.eup %2244 }
 0x7db   : > { %v1444_v16 = vmul.f32 %v2245_v15, %v1436_v2 }
 0x7dd   : > { %v1449_v20 = vmul.f32 %v1448_v14, %v1444_v16 }
 0x7df   : > { %v1454_v21 = vadd.f32 %v1453_v18, %v1449_v20 }
 0x7e1   : > { %2089 = vmatmul.mubr.msk.f32.vlgmr.msra.gmra.mxu1 %vm542_vm1, %v1454_v21 }
 0x8a1   : > { %v1535_v39 = vpop.f32.mrf.mxu1 }
 0x8a2   : > { %v1536_v40 = vadd.f32 %v1951_v38, %v1535_v39 }
 0x8a3   : > { %v2090_v41 = vpop.f32.mrf.mxu1 }
 0x8a4   : > { %v1540_v42 = vmul.f32 0.044715, %v1536_v40  ;;  %v1539_v48 = vmul.f32 0.5, %v1536_v40 }
 0x8a6   : > { %v1541_v43 = vmul.f32 %v1540_v42, %v1536_v40 }
 0x8a8   : > { %v1542_v44 = vmul.f32 %v1541_v43, %v1536_v40 }
 0x8aa   : > { %v1543_v45 = vadd.f32 %v1542_v44, %v1536_v40 }
 0x8ac   : > { %v1544_v46 = vmul.f32 0.7978846, %v1543_v45 }
 0x8ae   : > { %2246 = vtanh.f32 %v1544_v46 }
 0x8bb   : > { %v2247_v47 = vpop.eup %2246 }
 0x8bc   : > { %v1546_v49 = vadd.f32 1.0, %v2247_v47 }
 0x8be   : > { %v1547_v50 = vmul.f32 %v1546_v49, %v1539_v48 }
 0x8c0   : > { %2124 = vmatmul.mubr.f32.vlgmr.msra.gmra.mxu0 %v1547_v50 }
 0x980   : > { %v1634_v52 = vpop.f32.mrf.mxu0 }
 0x981   : > { %v1635_v53 = vadd.f32 %v1634_v52, %v1567_v51  ;;  %1643 = sbr.rel (%p1953_p1) target bundleno = 2941 (0xb7d), region = 72 }
 0x982   : > { %v2125_v54 = vpop.f32.mrf.mxu0 }
 0x983   : > { %v1638_v55 = vadd.f32 %v1635_v53, %v2668_v61 }
 0x985   : > { %1639 = vst.msk [vmem:[#allocation2] sm:$0xff] %vm542_vm1, %v1638_v55 }
 0x986   : > { %v1646_v56 = vsel %vm542_vm1, %v1638_v55, 0.0  ;;  %v1672_v19 = vld [vmem:[%s2808_s10 + $0x18] sm:$0xff]  ;;  %v2360_v61 = vmov 0.0   ;;  %v1671_v62 = vld [vmem:[%s2808_s10 + $0x10] sm:$0xff]  ;;  %vm2361_vm7 = vmmov 0   ;;  %v1670_v63 = vld [vmem:[%s2808_s10 + $0x8] sm:$0xff] }
 0x987   : > { %1647 = vadd.xlane.f32.xlu0 %v1646_v56  ;;  %2126 = vmatprep.subr.mxu0 %v2360_v61  ;;  %v1669_v0 = vld [vmem:[%s2808_s10] sm:$0xff] }
 0x988   : > { %2134 = vmatprep.mubr.msk.f32.mxu0 %vm2361_vm7, %v2360_v61  ;;  %2127 = vmatpush3.msra.mxu0 %v1672_v19  ;;  %v1954_v6 = vld [vmem:[%s2846_s12] ss:$0 sm:$0xff]  ;;  %v1955_v7 = vld [vmem:[%s2846_s12 + $0x1] ss:$0 sm:$0xff] }
 0x989   : > { %2128 = vmatprep.subr.mxu0 %v2360_v61 }
 0x98a   : > { %2129 = vmatpush3.msra.mxu0 %v1671_v62 }
 0x98b   : > { %2130 = vmatprep.subr.mxu0 %v2360_v61 }
 0x98c   : > { %2131 = vmatpush3.msra.mxu0 %v1670_v63 }
 0x98d   : > { %2132 = vmatprep.subr.mxu0 %v2360_v61 }
 0x98e   : > { %2133 = vmatpush3.msra.mxu0 %v1669_v0 }
 0xa10   : > { %v1648_v57 = vpop.xlane.xlu0 %1647 }
 0xa11   : > { %v1649_v58 = vmul.f32 0.03125, %v1648_v57 }
 0xa13   : > { %v1650_v59 = vsub.f32 %v1638_v55, %v1649_v58 }
 0xa15   : > { %v1651_v60 = vmul.f32 %v1650_v59, %v1650_v59 }
 0xa17   : > { %v1652_v17 = vsel %vm542_vm1, %v1651_v60, 0.0 }
 0xa18   : > { %1653 = vadd.xlane.f32.xlu0 %v1652_v17 }
 0xaa1   : > { %v1654_v2 = vpop.xlane.xlu0 %1653 }
 0xaa2   : > { %v1655_v3 = vmul.f32 0.03125, %v1654_v2 }
 0xaa4   : > { %v1656_v4 = vadd.f32 1e-05, %v1655_v3 }
 0xaa6   : > { %2248 = vrsqrt.f32 %v1656_v4 }
 0xab3   : > { %v2249_v5 = vpop.eup %2248 }
 0xab4   : > { %v1658_v1 = vmul.f32 %v2249_v5, %v1650_v59 }
 0xab6   : > { %v1663_v8 = vmul.f32 %v1954_v6, %v1658_v1 }
 0xab8   : > { %v1668_v10 = vadd.f32 %v1955_v7, %v1663_v8 }
 0xaba   : > { %2135 = vmatmul.mubr.msk.f32.vlgmr.msra.gmra.mxu0 %vm542_vm1, %v1668_v10 }
 0xb7a   : > { %v1742_v11 = vpop.f32.mrf.mxu0 }
 0xb7b   : > { %1746 = vst [vmem:[%s495_s21] sm:$0xff] %v1742_v11 }
 0xb7c   : > { %v2136_v12 = vpop.f32.mrf.mxu0 }
 0xb7d PF: > { %s2847_s14 = sld [smem:[#allocation9_spill]]  ;;  %s1761_s11 = sshll.u32 %s495_s21, 4  ;;  %s1762_s11 = int_to_ptr.vmem [resolvable:$true] %s1761_s11 }
 0xb7e   : > { %s2848_s29 = sld [smem:[#allocation7_spill]]  ;;  %s2250_s20 = scalar_lea.vmem %s1762_s11, 128 }
 0xb7f   : > { %s2850_s23 = sld [smem:[#allocation21_spill]]  ;;  %p2251_p2 = scmp.ne.s32.totalorder %s1762_s11, %s2250_s20 }
 0xb80   : > { %s2362_s24 = smov [#allocation3]  }
 0xb81   : > { %p2252_p4 = pnand %p2251_p2, %p2472_p3  ;;  %s2254_s27 = sshll.u32 %s2362_s24, 4  ;;  %s2255_s27 = int_to_ptr.vmem [resolvable:$false] %s2254_s27 }
 0xb82   : > { %s2256_s28 = scalar_lea.vmem %s2255_s27, 256  ;;  %p2257_p6 = scmp.lt.s32.totalorder %s1762_s11, %s2255_s27 }
 0xb83   : > { %s1958_s2 = sshll.u32 %s2847_s14, 7  ;;  %p2253_p5 = pneg %p2252_p4 }
 0xb84   : > { %s2852_s9 = sand.u32 1, %s2848_s29   ;;  %p2258_p7 = scmp.lt.s32.totalorder %s2256_s28, %s2250_s20 }
 0xb85   : > { %s2851_s26 = smov %s2850_s23  ;;  %s1759_s19 = scalar_lea.hbm %s2850_s23, %s1958_s2 }
 0xb86   : > { %s1748_s22 = scalar_lea.sflag [#allocation4], %s2852_s9  ;;  %p2259_p8 = por %p2258_p7, %p2257_p6 }
 0xb88   : > { %p2260_p10 = pnand %p2259_p8, %p2253_p5 }
 0xb8a   : > { %2263 = shalt.err (!%p2260_p10)
}
 0xb8b   : > { %s2264_s13 = scalar_lea.hbm %s1759_s19, 128  ;;  %s2268_s15 = scalar_lea.hbm %s2851_s26, 256 }
 0xb8c   : > { %p2265_p11 = scmp.ne.s32.totalorder %s1759_s19, %s2264_s13  ;;  %p2269_p0 = scmp.lt.s32.totalorder %s1759_s19, %s2851_s26 }
 0xb8d   : > { %p2270_p1 = scmp.lt.s32.totalorder %s2268_s15, %s2264_s13 }
 0xb8e   : > { %p2266_p12 = pnand %p2265_p11, %p2472_p3 }
 0xb8f   : > { %p2271_p2 = por %p2270_p1, %p2269_p0 }
 0xb90   : > { %p2267_p13 = pneg %p2266_p12 }
 0xb92   : > { %p2272_p4 = pnand %p2271_p2, %p2267_p13 }
 0xb94   : > { %2275 = shalt.err (!%p2272_p4)
}
 0xb95   : > { %2137 = dma.vmem_to_hbm [thread:$0]  (%p2472_p3), %s1762_s11, 128, %s1759_s19, %s1748_s22  }
 0xb96 PF: > { %s2853_s14 = sld [smem:[#allocation12_spill]] }
 0xb97   : > { %s2854_s29 = sld [smem:[#allocation6_spill]] }
 0xb9c   : > { %p2143_p5 = scmp.ge.s32.totalorder %s2853_s14, 2 }
 0xb9d   : > { %s1773_s17 = sand.u32 1, %s2854_s29  }
 0xb9e   : > { %p2140_p6 = pnand %p2143_p5, %p2482_p9  ;;  %s1774_s18 = scalar_lea.sflag [#allocation4], %s1773_s17 }
 0xba0   : > { %p2141_p7 = pneg %p2140_p6 }
 0xba2   : > { %2309 = dma.done.wait (%p2141_p7), %s1774_s18, 128  }
 0xba3   : > { %2311 = vsyncadd (%p2141_p7), %s1774_s18, 4294967168  ;;  %s24_s24 = sadd.s32 1, %s2853_s14   ;;  %s2856_s17 = sld [smem:[#allocation7_spill]] }
 0xba4   : > { %p21_p8 = scmp.ge.s32.totalorder %s24_s24, 6   ;;  %s2857_s18 = sld [smem:[#allocation8_spill]] }
 0xba5   : > { %s2858_s19 = sld [smem:[#allocation17_spill]] }
 0xba6   : > { %s2859_s20 = sld [smem:[#allocation10_spill]]  ;;  %23 = sbr.rel (!%p21_p8) target bundleno = 10 (0xa), region = 131 }
 0xba7   : > { %s2860_s21 = sld [smem:[#allocation11_spill]] }
 0xba8   : > { %s2861_s22 = sld [smem:[#allocation13_spill]] }
 0xba9   : > { %s2862_s23 = sld [smem:[#allocation15_spill]] }
 0xbab   :  { %1779 = vsyncpa [#allocation4], 1 }
 0xbac   :  { %1781 = vsyncpa [#allocation4 + $0x1], 1 }

</bundles_post_ra>
